<compile_context>
chip_gen: v6e
topology: v6e:2x2x1
jax: 0.10.0
libtpu: 0.0.40
codegen_flags: <defaults>
</compile_context>

<pallas_src>
import numpy as np
import jax
import jax.numpy as jnp
from jax import lax
from jax.experimental import pallas as pl
from jax.experimental.pallas import tpu as pltpu

Q0 = 4 + 2.5 + 1.5 + 0             # 8.0
DT = 0.5                           # integration step (the `dt` passed to forward)
NSTEPS = int(7 / DT)               # 14 Euler steps (one week)
STRIDE = int(1 / DT)               # 2  -> keep one sample per day
NOUT = (NSTEPS + 1 - 1) // STRIDE + 1   # unfold(size=1, step=2) over 15 cols -> 8
THRESH = 0.01
VM = 1.0                           # Vm hard-coded to 1.0 in the PyTorch forward
PARAM_SCALE = jnp.array([1, 2, 0.1, 0.05, 0.1, 0.3, 0.6, 0.15, 0.4, 0.1],
                        dtype=jnp.float32)

_NPAR = 10
_NSTATE = 4
_LANES = 128
_SUBROWS = 8
_CHUNK = _SUBROWS * _LANES          # 1024 sites per chunk (one vreg per value)
_MAX_CHUNKS_PER_BLOCK = 32          # 256 sublane rows / grid step (~16 MiB dbl-buf;
                                    # v5e/v6e could raise to 64+ with more VMEM)


def _make_npzd_kernel(cpb):
    """Build the kernel for a static chunks-per-block `cpb`."""

    def kernel(bidx_ref, params_ref, state_ref, f_ref, d_ref, out_ref):
        # bidx_ref   : SMEM (n_chunks,)            int32  per-chunk batch index
        # params_ref : SMEM (B*10,)                f32    scaled parameters
        # state_ref  : VMEM (4,      cpb, 8, 128)  initial N, P, Z, D
        # f_ref      : VMEM (NSTEPS, cpb, 8, 128)  forcing per step
        # d_ref      : VMEM (NSTEPS, cpb, 8, 128)  dilution per step
        # out_ref    : VMEM (4, NOUT, cpb, 8, 128)
        blk = pl.program_id(0)
        dt = jnp.float32(DT)
        thr = jnp.float32(THRESH)
        q0 = jnp.float32(Q0)

        def chunk_body(j, carry):
            base = bidx_ref[blk * cpb + j] * _NPAR
            Kn    = params_ref[base + 0]
            Rm    = params_ref[base + 1]
            g     = params_ref[base + 2]
            lambd = params_ref[base + 3]
            eps   = params_ref[base + 4]
            alpha = params_ref[base + 5]
            beta  = params_ref[base + 6]
            r     = params_ref[base + 7]
            phi   = params_ref[base + 8]
            Sw    = params_ref[base + 9]

            # loop-invariant, dt-folded coefficients (scalar work once/chunk)
            dRm = dt * Rm
            nL  = -lambd
            dE  = dt * eps
            dG  = dt * g
            dPh = dt * phi
            dR  = dt * r
            dPS = dt * (phi + Sw)
            oAB = 1.0 - alpha - beta

            N = state_ref[0, j, :, :]
            P = state_ref[1, j, :, :]
            Z = state_ref[2, j, :, :]
            D = state_ref[3, j, :, :]

            # step 0 (initial state) is the first output column; every store is
            # a full unmasked (8,128) vreg.
            out_ref[0, 0, j, :, :] = N
            out_ref[1, 0, j, :, :] = P
            out_ref[2, 0, j, :, :] = Z
            out_ref[3, 0, j, :, :] = D

            # 14 explicit-Euler steps, statically unrolled (1 vreg / live value)
            for i_t in range(NSTEPS):
                f_i  = f_ref[i_t, j, :, :]
                d_dt = dt * d_ref[i_t, j, :, :]

                Pm = jnp.maximum(thr, P)
                Zm = jnp.maximum(thr, Z)
                zoo_dt = dRm * (1.0 - jnp.exp(nL * Pm)) * Zm       # = dt * zoo_graze
                gamma = N * pl.reciprocal(Kn + N, approx=False)    # divide via EUP
                U_dt = dt * gamma * f_i * Pm                       # Vm == 1.0

                N_new = (N - U_dt + alpha * zoo_dt + dE * P + dG * Z + dPh * D
                         + d_dt * (q0 - N))
                P_new = P + U_dt - zoo_dt - (dE + dR + d_dt) * P
                Z_new = Z + beta * zoo_dt - (dG + d_dt) * Z
                D_new = D + dR * P + oAB * zoo_dt - (dPS + d_dt) * D
                N, P, Z, D = N_new, P_new, Z_new, D_new

                if (i_t + 1) % STRIDE == 0:          # keep daily samples (stride 2)
                    k = (i_t + 1) // STRIDE
                    out_ref[0, k, j, :, :] = N
                    out_ref[1, k, j, :, :] = P
                    out_ref[2, k, j, :, :] = Z
                    out_ref[3, k, j, :, :] = D
            return carry

        lax.fori_loop(0, cpb, chunk_body, 0)

    return kernel


@jax.jit
def _forward_impl(params_value, X_in, global_f, global_delta):
    B, S = X_in.shape[0], X_in.shape[1]
    F_len = global_f.shape[1]

    # per-batch padding so no 8x128 chunk straddles two batches
    S_pad = ((S + _CHUNK - 1) // _CHUNK) * _CHUNK
    chunks_per_batch = S_pad // _CHUNK
    n_chunks0 = B * chunks_per_batch
    cpb = min(_MAX_CHUNKS_PER_BLOCK, n_chunks0)
    n_blocks = (n_chunks0 + cpb - 1) // cpb
    n_chunks = n_blocks * cpb
    n_sites = n_chunks * _CHUNK

    time = X_in[:, :, 0, 0].astype(jnp.float32)                    # (B, S)

    # --- forcing / dilution gather (torch.index_select equivalent) ----------
    # TODO(synk): the data-dependent gather stays in the JAX wrapper; an
    # in-kernel per-site gather would need manual DMA and is not the hot path.
    offs = jnp.arange(NSTEPS, dtype=jnp.float32) * 24.0
    idx = jnp.round(time[:, :, None] * 24.0 + offs[None, None, :]).astype(jnp.int32)
    idx = jnp.clip(idx, 0, F_len - 1)          # explicit OOB clamp
    gather = jax.vmap(lambda tab, ix: tab[ix])                     # (F,),(S,T)->(S,T)
    f_tab = gather(global_f.astype(jnp.float32), idx)              # (B, S, NSTEPS)
    d_tab = gather(global_delta.astype(jnp.float32), idx)          # (B, S, NSTEPS)

    def to_chunks(a, pad_value):
        # a: (C, B, S) -> (C, n_chunks, 8, 128)
        C = a.shape[0]
        a = jnp.pad(a, ((0, 0), (0, 0), (0, S_pad - S)), constant_values=pad_value)
        a = a.reshape(C, n_chunks0, _SUBROWS, _LANES)
        if n_chunks > n_chunks0:
            a = jnp.pad(a, ((0, 0), (0, n_chunks - n_chunks0), (0, 0), (0, 0)),
                        constant_values=pad_value)
        return a

    state = jnp.transpose(X_in[:, :, 1:1 + _NSTATE, 0], (2, 0, 1)).astype(jnp.float32)
    f_rows = jnp.transpose(f_tab, (2, 0, 1))                       # (NSTEPS, B, S)
    d_rows = jnp.transpose(d_tab, (2, 0, 1))

    state_arr = to_chunks(state, 1.0)    # pad with 1.0 so Kn+N stays > 0
    f_arr = to_chunks(f_rows, 0.0)
    d_arr = to_chunks(d_rows, 0.0)

    params_flat = (params_value.astype(jnp.float32) * PARAM_SCALE).reshape(-1)  # (B*10,)
    bidx = jnp.repeat(jnp.arange(B, dtype=jnp.int32), chunks_per_batch)
    if n_chunks > n_chunks0:             # tail padding chunks reuse last batch's params
        bidx = jnp.concatenate(
            [bidx, jnp.full((n_chunks - n_chunks0,), B - 1, dtype=jnp.int32)])

    out = pl.pallas_call(
        _make_npzd_kernel(cpb),
        out_shape=jax.ShapeDtypeStruct((_NSTATE, NOUT, n_chunks, _SUBROWS, _LANES),
                                       jnp.float32),
        grid_spec=pltpu.PrefetchScalarGridSpec(
            num_scalar_prefetch=2,
            grid=(n_blocks,),
            in_specs=[
                pl.BlockSpec((_NSTATE, cpb, _SUBROWS, _LANES),
                             lambda i, _b, _p: (0, i, 0, 0)),
                pl.BlockSpec((NSTEPS, cpb, _SUBROWS, _LANES),
                             lambda i, _b, _p: (0, i, 0, 0)),
                pl.BlockSpec((NSTEPS, cpb, _SUBROWS, _LANES),
                             lambda i, _b, _p: (0, i, 0, 0)),
            ],
            out_specs=pl.BlockSpec((_NSTATE, NOUT, cpb, _SUBROWS, _LANES),
                                   lambda i, _b, _p: (0, 0, i, 0, 0)),
        ),
        compiler_params=pltpu.CompilerParams(
            dimension_semantics=("parallel",),
            vmem_limit_bytes=48 * 1024 * 1024,
        ),
        cost_estimate=pl.CostEstimate(
            flops=35 * NSTEPS * n_sites,
            transcendentals=2 * NSTEPS * n_sites,
            bytes_accessed=4 * (_NSTATE + 2 * NSTEPS + _NSTATE * NOUT) * n_sites,
        ),
    )(bidx, params_flat, state_arr, f_arr, d_arr)

    # back to the PyTorch return layout (B, S, 4, NOUT); slice + transpose fuse
    # under jit.  TODO(synk): consumers accepting (4, NOUT, B, S) could skip it.
    out = out.reshape(_NSTATE, NOUT, n_chunks * _CHUNK)[:, :, :n_chunks0 * _CHUNK]
    out = out.reshape(_NSTATE, NOUT, B, S_pad)[:, :, :, :S]
    return jnp.transpose(out, (2, 3, 0, 1))


def model_npzd_forward(params_value, X_in, global_f, global_delta,
                       sampling_patt=None, dt=DT):
    """JAX/Pallas equivalent of Model_NPZD.forward (float32).

    X_in:         (B, S, >=5, 1)  channel 0 = time (days), 1..4 = N, P, Z, D
    global_f:     (B, F)          hourly forcing
    global_delta: (B, F)          hourly dilution
    params_value: (B, 10)
    returns       (B, S, 4, NOUT)
    """
    assert dt == DT
    del sampling_patt                     # unused by the PyTorch forward as well
    return _forward_impl(params_value, X_in, global_f, global_delta)


def reference_forward(params_value, X_in, global_f, global_delta):
    """Plain numpy float32 translation of the PyTorch loop (for validation)."""
    p = np.asarray(params_value, np.float32) * np.asarray(PARAM_SCALE)
    Kn, Rm, g, lambd, eps, alpha, beta, r, phi, Sw = [p[:, i][:, None] for i in range(10)]
    t = np.asarray(X_in[:, :, 0, 0], np.float32)
    N = np.asarray(X_in[:, :, 1, 0], np.float32)
    P = np.asarray(X_in[:, :, 2, 0], np.float32)
    Z = np.asarray(X_in[:, :, 3, 0], np.float32)
    D = np.asarray(X_in[:, :, 4, 0], np.float32)
    gf = np.asarray(global_f, np.float32)
    gd = np.asarray(global_delta, np.float32)

    outs = [np.stack([N, P, Z, D], axis=2)]
    for i_t in range(NSTEPS):
        idx = np.round(t * 24.0 + i_t * 24.0).astype(np.int32)
        f_i = np.take_along_axis(gf, idx, axis=1)
        d_i = np.take_along_axis(gd, idx, axis=1)
        gamma = N / (Kn + N)
        zoo = Rm * (1 - np.exp(-lambd * np.maximum(THRESH, P))) * np.maximum(THRESH, Z)
        up = VM * gamma * f_i * np.maximum(THRESH, P)
        Nn = N + DT * (-up + alpha * zoo + eps * P + g * Z + phi * D + d_i * (Q0 - N))
        Pn = P + DT * (up - zoo - eps * P - r * P - d_i * P)
        Zn = Z + DT * (beta * zoo - g * Z - d_i * Z)
        Dn = D + DT * (r * P + (1 - alpha - beta) * zoo - phi * D - Sw * D - d_i * D)
        N, P, Z, D = Nn, Pn, Zn, Dn
        if (i_t + 1) % STRIDE == 0:
            outs.append(np.stack([N, P, Z, D], axis=2))
    return np.stack(outs, axis=3)          # (B, S, 4, NOUT)


if __name__ == "__main__":
    def run_case(seed, B, S, F_LEN):
        key = jax.random.PRNGKey(seed)
        k1, k2, k3, k4, k5 = jax.random.split(key, 5)
        time = jax.random.uniform(k1, (B, S), minval=0.0, maxval=1.0)
        npzd0 = jax.random.uniform(k2, (B, S, 4), minval=0.5, maxval=3.0)
        X_in = jnp.concatenate([time[:, :, None], npzd0], axis=2)[:, :, :, None]  # (B,S,5,1)
        global_f = jax.random.uniform(k3, (B, F_LEN), minval=0.1, maxval=1.0)
        global_delta = jax.random.uniform(k4, (B, F_LEN), minval=0.0, maxval=0.05)
        params_value = jax.random.uniform(k5, (B, 10), minval=0.5, maxval=1.5)

        out = model_npzd_forward(params_value, X_in, global_f, global_delta, None, DT)
        out = jax.block_until_ready(out)
        assert out.shape == (B, S, 4, NOUT)

        ref = reference_forward(np.asarray(params_value), np.asarray(X_in),
                                np.asarray(global_f), np.asarray(global_delta))
        np.testing.assert_allclose(np.asarray(out), ref, rtol=1e-4, atol=1e-4)

    run_case(0, B=2, S=8, F_LEN=512)        # tiny, single chunk per batch
    run_case(1, B=2, S=1500, F_LEN=512)     # multiple chunks per batch (padding path)
    print("KERNEL_OK")
</pallas_src>

<mosaic_0001>
module attributes {stable_mosaic.version = 11 : i64} {
  func.func @kernel(%arg0: i32, %arg1: memref<2xi32, #tpu.memory_space<smem>>, %arg2: memref<20xf32, #tpu.memory_space<smem>>, %arg3: memref<4x2x8x128xf32, #tpu.memory_space<vmem>>, %arg4: memref<14x2x8x128xf32, #tpu.memory_space<vmem>>, %arg5: memref<14x2x8x128xf32, #tpu.memory_space<vmem>>, %arg6: memref<4x8x2x8x128xf32, #tpu.memory_space<vmem>>) attributes {dimension_semantics = [#tpu.dimension_semantics<parallel>], iteration_bounds = array<i64: 1>, scalar_prefetch = 2 : i64, scratch_operands = 0 : i64, tpu.core_type = #tpu.core_type<tc>, window_params = [{transform_indices = @transform_0, window_bounds = array<i64: 4, 2, 8, 128>}, {transform_indices = @transform_1, window_bounds = array<i64: 14, 2, 8, 128>}, {transform_indices = @transform_2, window_bounds = array<i64: 14, 2, 8, 128>}, {transform_indices = @transform_3, window_bounds = array<i64: 4, 8, 2, 8, 128>}]} {
    %cst = arith.constant 5.000000e-01 : f32
    %cst_0 = arith.constant 0.00999999977 : f32
    %cst_1 = arith.constant 8.000000e+00 : f32
    %c0_i32 = arith.constant 0 : i32
    %c2_i32 = arith.constant 2 : i32
    %0 = arith.addi %c0_i32, %c2_i32 : i32
    %c1_i32 = arith.constant 1 : i32
    scf.for %arg7 = %c0_i32 to %0 step %c1_i32  : i32 {
      %c2_i32_3 = arith.constant 2 : i32
      %1 = arith.muli %arg0, %c2_i32_3 : i32
      %2 = arith.addi %1, %arg7 : i32
      %3 = arith.index_cast %2 : i32 to index
      %4 = memref.load %arg1[%3] : memref<2xi32, #tpu.memory_space<smem>>
      %c10_i32 = arith.constant 10 : i32
      %5 = arith.muli %4, %c10_i32 : i32
      %c0_i32_4 = arith.constant 0 : i32
      %6 = arith.addi %5, %c0_i32_4 : i32
      %7 = arith.index_cast %6 : i32 to index
      %8 = memref.load %arg2[%7] : memref<20xf32, #tpu.memory_space<smem>>
      %c1_i32_5 = arith.constant 1 : i32
      %9 = arith.addi %5, %c1_i32_5 : i32
      %10 = arith.index_cast %9 : i32 to index
      %11 = memref.load %arg2[%10] : memref<20xf32, #tpu.memory_space<smem>>
      %c2_i32_6 = arith.constant 2 : i32
      %12 = arith.addi %5, %c2_i32_6 : i32
      %13 = arith.index_cast %12 : i32 to index
      %14 = memref.load %arg2[%13] : memref<20xf32, #tpu.memory_space<smem>>
      %c3_i32 = arith.constant 3 : i32
      %15 = arith.addi %5, %c3_i32 : i32
      %16 = arith.index_cast %15 : i32 to index
      %17 = memref.load %arg2[%16] : memref<20xf32, #tpu.memory_space<smem>>
      %c4_i32 = arith.constant 4 : i32
      %18 = arith.addi %5, %c4_i32 : i32
      %19 = arith.index_cast %18 : i32 to index
      %20 = memref.load %arg2[%19] : memref<20xf32, #tpu.memory_space<smem>>
      %c5_i32 = arith.constant 5 : i32
      %21 = arith.addi %5, %c5_i32 : i32
      %22 = arith.index_cast %21 : i32 to index
      %23 = memref.load %arg2[%22] : memref<20xf32, #tpu.memory_space<smem>>
      %c6_i32 = arith.constant 6 : i32
      %24 = arith.addi %5, %c6_i32 : i32
      %25 = arith.index_cast %24 : i32 to index
      %26 = memref.load %arg2[%25] : memref<20xf32, #tpu.memory_space<smem>>
      %c7_i32 = arith.constant 7 : i32
      %27 = arith.addi %5, %c7_i32 : i32
      %28 = arith.index_cast %27 : i32 to index
      %29 = memref.load %arg2[%28] : memref<20xf32, #tpu.memory_space<smem>>
      %c8_i32 = arith.constant 8 : i32
      %30 = arith.addi %5, %c8_i32 : i32
      %31 = arith.index_cast %30 : i32 to index
      %32 = memref.load %arg2[%31] : memref<20xf32, #tpu.memory_space<smem>>
      %c9_i32 = arith.constant 9 : i32
      %33 = arith.addi %5, %c9_i32 : i32
      %34 = arith.index_cast %33 : i32 to index
      %35 = memref.load %arg2[%34] : memref<20xf32, #tpu.memory_space<smem>>
      %36 = arith.mulf %cst, %11 : f32
      %cst_7 = arith.constant 0.000000e+00 : f32
      %37 = arith.subf %cst_7, %17 : f32
      %38 = arith.mulf %cst, %20 : f32
      %39 = arith.mulf %cst, %14 : f32
      %40 = arith.mulf %cst, %32 : f32
      %41 = arith.mulf %cst, %29 : f32
      %42 = arith.addf %32, %35 : f32
      %43 = arith.mulf %cst, %42 : f32
      %cst_8 = arith.constant 1.000000e+00 : f32
      %44 = arith.subf %cst_8, %23 : f32
      %45 = arith.subf %44, %26 : f32
      %c0 = arith.constant 0 : index
      %46 = arith.index_cast %arg7 : i32 to index
      %c0_9 = arith.constant 0 : index
      %c0_10 = arith.constant 0 : index
      %47 = vector.load %arg3[%c0, %46, %c0_9, %c0_10] : memref<4x2x8x128xf32, #tpu.memory_space<vmem>>, vector<1x1x8x128xf32>
      %48 = vector.shape_cast %47 : vector<1x1x8x128xf32> to vector<8x128xf32>
      %c1 = arith.constant 1 : index
      %49 = arith.index_cast %arg7 : i32 to index
      %c0_11 = arith.constant 0 : index
      %c0_12 = arith.constant 0 : index
      %50 = vector.load %arg3[%c1, %49, %c0_11, %c0_12] : memref<4x2x8x128xf32, #tpu.memory_space<vmem>>, vector<1x1x8x128xf32>
      %51 = vector.shape_cast %50 : vector<1x1x8x128xf32> to vector<8x128xf32>
      %c2 = arith.constant 2 : index
      %52 = arith.index_cast %arg7 : i32 to index
      %c0_13 = arith.constant 0 : index
      %c0_14 = arith.constant 0 : index
      %53 = vector.load %arg3[%c2, %52, %c0_13, %c0_14] : memref<4x2x8x128xf32, #tpu.memory_space<vmem>>, vector<1x1x8x128xf32>
      %54 = vector.shape_cast %53 : vector<1x1x8x128xf32> to vector<8x128xf32>
      %c3 = arith.constant 3 : index
      %55 = arith.index_cast %arg7 : i32 to index
      %c0_15 = arith.constant 0 : index
      %c0_16 = arith.constant 0 : index
      %56 = vector.load %arg3[%c3, %55, %c0_15, %c0_16] : memref<4x2x8x128xf32, #tpu.memory_space<vmem>>, vector<1x1x8x128xf32>
      %57 = vector.shape_cast %56 : vector<1x1x8x128xf32> to vector<8x128xf32>
      %c0_17 = arith.constant 0 : index
      %c0_18 = arith.constant 0 : index
      %58 = arith.index_cast %arg7 : i32 to index
      %c0_19 = arith.constant 0 : index
      %c0_20 = arith.constant 0 : index
      %59 = vector.load %arg6[%c0_17, %c0_18, %58, %c0_19, %c0_20] : memref<4x8x2x8x128xf32, #tpu.memory_space<vmem>>, vector<1x1x1x8x128xf32>
      %60 = vector.shape_cast %59 : vector<1x1x1x8x128xf32> to vector<8x128xf32>
      %61 = vector.shape_cast %48 : vector<8x128xf32> to vector<1x1x1x8x128xf32>
      tpu.vector_store %arg6[%c0_17, %c0_18, %58, %c0_19, %c0_20], %61 {strides = array<i32>} : memref<4x8x2x8x128xf32, #tpu.memory_space<vmem>>, vector<1x1x1x8x128xf32>,
      %c1_21 = arith.constant 1 : index
      %c0_22 = arith.constant 0 : index
      %62 = arith.index_cast %arg7 : i32 to index
      %c0_23 = arith.constant 0 : index
      %c0_24 = arith.constant 0 : index
      %63 = vector.load %arg6[%c1_21, %c0_22, %62, %c0_23, %c0_24] : memref<4x8x2x8x128xf32, #tpu.memory_space<vmem>>, vector<1x1x1x8x128xf32>
      %64 = vector.shape_cast %63 : vector<1x1x1x8x128xf32> to vector<8x128xf32>
      %65 = vector.shape_cast %51 : vector<8x128xf32> to vector<1x1x1x8x128xf32>
      tpu.vector_store %arg6[%c1_21, %c0_22, %62, %c0_23, %c0_24], %65 {strides = array<i32>} : memref<4x8x2x8x128xf32, #tpu.memory_space<vmem>>, vector<1x1x1x8x128xf32>,
      %c2_25 = arith.constant 2 : index
      %c0_26 = arith.constant 0 : index
      %66 = arith.index_cast %arg7 : i32 to index
      %c0_27 = arith.constant 0 : index
      %c0_28 = arith.constant 0 : index
      %67 = vector.load %arg6[%c2_25, %c0_26, %66, %c0_27, %c0_28] : memref<4x8x2x8x128xf32, #tpu.memory_space<vmem>>, vector<1x1x1x8x128xf32>
      %68 = vector.shape_cast %67 : vector<1x1x1x8x128xf32> to vector<8x128xf32>
      %69 = vector.shape_cast %54 : vector<8x128xf32> to vector<1x1x1x8x128xf32>
      tpu.vector_store %arg6[%c2_25, %c0_26, %66, %c0_27, %c0_28], %69 {strides = array<i32>} : memref<4x8x2x8x128xf32, #tpu.memory_space<vmem>>, vector<1x1x1x8x128xf32>,
      %c3_29 = arith.constant 3 : index
      %c0_30 = arith.constant 0 : index
      %70 = arith.index_cast %arg7 : i32 to index
      %c0_31 = arith.constant 0 : index
      %c0_32 = arith.constant 0 : index
      %71 = vector.load %arg6[%c3_29, %c0_30, %70, %c0_31, %c0_32] : memref<4x8x2x8x128xf32, #tpu.memory_space<vmem>>, vector<1x1x1x8x128xf32>
      %72 = vector.shape_cast %71 : vector<1x1x1x8x128xf32> to vector<8x128xf32>
      %73 = vector.shape_cast %57 : vector<8x128xf32> to vector<1x1x1x8x128xf32>
      tpu.vector_store %arg6[%c3_29, %c0_30, %70, %c0_31, %c0_32], %73 {strides = array<i32>} : memref<4x8x2x8x128xf32, #tpu.memory_space<vmem>>, vector<1x1x1x8x128xf32>,
      %c0_33 = arith.constant 0 : index
      %74 = arith.index_cast %arg7 : i32 to index
      %c0_34 = arith.constant 0 : index
      %c0_35 = arith.constant 0 : index
      %75 = vector.load %arg4[%c0_33, %74, %c0_34, %c0_35] : memref<14x2x8x128xf32, #tpu.memory_space<vmem>>, vector<1x1x8x128xf32>
      %76 = vector.shape_cast %75 : vector<1x1x8x128xf32> to vector<8x128xf32>
      %c0_36 = arith.constant 0 : index
      %77 = arith.index_cast %arg7 : i32 to index
      %c0_37 = arith.constant 0 : index
      %c0_38 = arith.constant 0 : index
      %78 = vector.load %arg5[%c0_36, %77, %c0_37, %c0_38] : memref<14x2x8x128xf32, #tpu.memory_space<vmem>>, vector<1x1x8x128xf32>
      %79 = vector.shape_cast %78 : vector<1x1x8x128xf32> to vector<8x128xf32>
      %80 = vector.broadcast %cst : f32 to vector<8x128xf32>
      %81 = arith.mulf %80, %79 : vector<8x128xf32>
      %82 = vector.broadcast %cst_0 : f32 to vector<8x128xf32>
      %83 = arith.maximumf %82, %51 : vector<8x128xf32>
      %84 = vector.broadcast %cst_0 : f32 to vector<8x128xf32>
      %85 = arith.maximumf %84, %54 : vector<8x128xf32>
      %86 = vector.broadcast %37 : f32 to vector<8x128xf32>
      %87 = arith.mulf %86, %83 : vector<8x128xf32>
      %88 = math.exp %87 : vector<8x128xf32>
      %cst_39 = arith.constant 1.000000e+00 : f32
      %89 = vector.broadcast %cst_39 : f32 to vector<8x128xf32>
      %90 = arith.subf %89, %88 : vector<8x128xf32>
      %91 = vector.broadcast %36 : f32 to vector<8x128xf32>
      %92 = arith.mulf %91, %90 : vector<8x128xf32>
      %93 = arith.mulf %92, %85 : vector<8x128xf32>
      %94 = vector.broadcast %8 : f32 to vector<8x128xf32>
      %95 = arith.addf %94, %48 : vector<8x128xf32>
      %96 = tpu.reciprocal %95 : vector<8x128xf32> -> vector<8x128xf32>
      %97 = arith.mulf %48, %96 : vector<8x128xf32>
      %98 = vector.broadcast %cst : f32 to vector<8x128xf32>
      %99 = arith.mulf %98, %97 : vector<8x128xf32>
      %100 = arith.mulf %99, %76 : vector<8x128xf32>
      %101 = arith.mulf %100, %83 : vector<8x128xf32>
      %102 = arith.subf %48, %101 : vector<8x128xf32>
      %103 = vector.broadcast %23 : f32 to vector<8x128xf32>
      %104 = arith.mulf %103, %93 : vector<8x128xf32>
      %105 = arith.addf %102, %104 : vector<8x128xf32>
      %106 = vector.broadcast %38 : f32 to vector<8x128xf32>
      %107 = arith.mulf %106, %51 : vector<8x128xf32>
      %108 = arith.addf %105, %107 : vector<8x128xf32>
      %109 = vector.broadcast %39 : f32 to vector<8x128xf32>
      %110 = arith.mulf %109, %54 : vector<8x128xf32>
      %111 = arith.addf %108, %110 : vector<8x128xf32>
      %112 = vector.broadcast %40 : f32 to vector<8x128xf32>
      %113 = arith.mulf %112, %57 : vector<8x128xf32>
      %114 = arith.addf %111, %113 : vector<8x128xf32>
      %115 = vector.broadcast %cst_1 : f32 to vector<8x128xf32>
      %116 = arith.subf %115, %48 : vector<8x128xf32>
      %117 = arith.mulf %81, %116 : vector<8x128xf32>
      %118 = arith.addf %114, %117 : vector<8x128xf32>
      %119 = arith.addf %51, %101 : vector<8x128xf32>
      %120 = arith.subf %119, %93 : vector<8x128xf32>
      %121 = arith.addf %38, %41 : f32
      %122 = vector.broadcast %121 : f32 to vector<8x128xf32>
      %123 = arith.addf %122, %81 : vector<8x128xf32>
      %124 = arith.mulf %123, %51 : vector<8x128xf32>
      %125 = arith.subf %120, %124 : vector<8x128xf32>
      %126 = vector.broadcast %26 : f32 to vector<8x128xf32>
      %127 = arith.mulf %126, %93 : vector<8x128xf32>
      %128 = arith.addf %54, %127 : vector<8x128xf32>
      %129 = vector.broadcast %39 : f32 to vector<8x128xf32>
      %130 = arith.addf %129, %81 : vector<8x128xf32>
      %131 = arith.mulf %130, %54 : vector<8x128xf32>
      %132 = arith.subf %128, %131 : vector<8x128xf32>
      %133 = vector.broadcast %41 : f32 to vector<8x128xf32>
      %134 = arith.mulf %133, %51 : vector<8x128xf32>
      %135 = arith.addf %57, %134 : vector<8x128xf32>
      %136 = vector.broadcast %45 : f32 to vector<8x128xf32>
      %137 = arith.mulf %136, %93 : vector<8x128xf32>
      %138 = arith.addf %135, %137 : vector<8x128xf32>
      %139 = vector.broadcast %43 : f32 to vector<8x128xf32>
      %140 = arith.addf %139, %81 : vector<8x128xf32>
      %141 = arith.mulf %140, %57 : vector<8x128xf32>
      %142 = arith.subf %138, %141 : vector<8x128xf32>
      %c1_40 = arith.constant 1 : index
      %143 = arith.index_cast %arg7 : i32 to index
      %c0_41 = arith.constant 0 : index
      %c0_42 = arith.constant 0 : index
      %144 = vector.load %arg4[%c1_40, %143, %c0_41, %c0_42] : memref<14x2x8x128xf32, #tpu.memory_space<vmem>>, vector<1x1x8x128xf32>
      %145 = vector.shape_cast %144 : vector<1x1x8x128xf32> to vector<8x128xf32>
      %c1_43 = arith.constant 1 : index
      %146 = arith.index_cast %arg7 : i32 to index
      %c0_44 = arith.constant 0 : index
      %c0_45 = arith.constant 0 : index
      %147 = vector.load %arg5[%c1_43, %146, %c0_44, %c0_45] : memref<14x2x8x128xf32, #tpu.memory_space<vmem>>, vector<1x1x8x128xf32>
      %148 = vector.shape_cast %147 : vector<1x1x8x128xf32> to vector<8x128xf32>
      %149 = vector.broadcast %cst : f32 to vector<8x128xf32>
      %150 = arith.mulf %149, %148 : vector<8x128xf32>
      %151 = vector.broadcast %cst_0 : f32 to vector<8x128xf32>
      %152 = arith.maximumf %151, %125 : vector<8x128xf32>
      %153 = vector.broadcast %cst_0 : f32 to vector<8x128xf32>
      %154 = arith.maximumf %153, %132 : vector<8x128xf32>
      %155 = vector.broadcast %37 : f32 to vector<8x128xf32>
      %156 = arith.mulf %155, %152 : vector<8x128xf32>
      %157 = math.exp %156 : vector<8x128xf32>
      %cst_46 = arith.constant 1.000000e+00 : f32
      %158 = vector.broadcast %cst_46 : f32 to vector<8x128xf32>
      %159 = arith.subf %158, %157 : vector<8x128xf32>
      %160 = vector.broadcast %36 : f32 to vector<8x128xf32>
      %161 = arith.mulf %160, %159 : vector<8x128xf32>
      %162 = arith.mulf %161, %154 : vector<8x128xf32>
      %163 = vector.broadcast %8 : f32 to vector<8x128xf32>
      %164 = arith.addf %163, %118 : vector<8x128xf32>
      %165 = tpu.reciprocal %164 : vector<8x128xf32> -> vector<8x128xf32>
      %166 = arith.mulf %118, %165 : vector<8x128xf32>
      %167 = vector.broadcast %cst : f32 to vector<8x128xf32>
      %168 = arith.mulf %167, %166 : vector<8x128xf32>
      %169 = arith.mulf %168, %145 : vector<8x128xf32>
      %170 = arith.mulf %169, %152 : vector<8x128xf32>
      %171 = arith.subf %118, %170 : vector<8x128xf32>
      %172 = vector.broadcast %23 : f32 to vector<8x128xf32>
      %173 = arith.mulf %172, %162 : vector<8x128xf32>
      %174 = arith.addf %171, %173 : vector<8x128xf32>
      %175 = vector.broadcast %38 : f32 to vector<8x128xf32>
      %176 = arith.mulf %175, %125 : vector<8x128xf32>
      %177 = arith.addf %174, %176 : vector<8x128xf32>
      %178 = vector.broadcast %39 : f32 to vector<8x128xf32>
      %179 = arith.mulf %178, %132 : vector<8x128xf32>
      %180 = arith.addf %177, %179 : vector<8x128xf32>
      %181 = vector.broadcast %40 : f32 to vector<8x128xf32>
      %182 = arith.mulf %181, %142 : vector<8x128xf32>
      %183 = arith.addf %180, %182 : vector<8x128xf32>
      %184 = vector.broadcast %cst_1 : f32 to vector<8x128xf32>
      %185 = arith.subf %184, %118 : vector<8x128xf32>
      %186 = arith.mulf %150, %185 : vector<8x128xf32>
      %187 = arith.addf %183, %186 : vector<8x128xf32>
      %188 = arith.addf %125, %170 : vector<8x128xf32>
      %189 = arith.subf %188, %162 : vector<8x128xf32>
      %190 = arith.addf %38, %41 : f32
      %191 = vector.broadcast %190 : f32 to vector<8x128xf32>
      %192 = arith.addf %191, %150 : vector<8x128xf32>
      %193 = arith.mulf %192, %125 : vector<8x128xf32>
      %194 = arith.subf %189, %193 : vector<8x128xf32>
      %195 = vector.broadcast %26 : f32 to vector<8x128xf32>
      %196 = arith.mulf %195, %162 : vector<8x128xf32>
      %197 = arith.addf %132, %196 : vector<8x128xf32>
      %198 = vector.broadcast %39 : f32 to vector<8x128xf32>
      %199 = arith.addf %198, %150 : vector<8x128xf32>
      %200 = arith.mulf %199, %132 : vector<8x128xf32>
      %201 = arith.subf %197, %200 : vector<8x128xf32>
      %202 = vector.broadcast %41 : f32 to vector<8x128xf32>
      %203 = arith.mulf %202, %125 : vector<8x128xf32>
      %204 = arith.addf %142, %203 : vector<8x128xf32>
      %205 = vector.broadcast %45 : f32 to vector<8x128xf32>
      %206 = arith.mulf %205, %162 : vector<8x128xf32>
      %207 = arith.addf %204, %206 : vector<8x128xf32>
      %208 = vector.broadcast %43 : f32 to vector<8x128xf32>
      %209 = arith.addf %208, %150 : vector<8x128xf32>
      %210 = arith.mulf %209, %142 : vector<8x128xf32>
      %211 = arith.subf %207, %210 : vector<8x128xf32>
      %c0_47 = arith.constant 0 : index
      %c1_48 = arith.constant 1 : index
      %212 = arith.index_cast %arg7 : i32 to index
      %c0_49 = arith.constant 0 : index
      %c0_50 = arith.constant 0 : index
      %213 = vector.load %arg6[%c0_47, %c1_48, %212, %c0_49, %c0_50] : memref<4x8x2x8x128xf32, #tpu.memory_space<vmem>>, vector<1x1x1x8x128xf32>
      %214 = vector.shape_cast %213 : vector<1x1x1x8x128xf32> to vector<8x128xf32>
      %215 = vector.shape_cast %187 : vector<8x128xf32> to vector<1x1x1x8x128xf32>
      tpu.vector_store %arg6[%c0_47, %c1_48, %212, %c0_49, %c0_50], %215 {strides = array<i32>} : memref<4x8x2x8x128xf32, #tpu.memory_space<vmem>>, vector<1x1x1x8x128xf32>,
      %c1_51 = arith.constant 1 : index
      %c1_52 = arith.constant 1 : index
      %216 = arith.index_cast %arg7 : i32 to index
      %c0_53 = arith.constant 0 : index
      %c0_54 = arith.constant 0 : index
      %217 = vector.load %arg6[%c1_51, %c1_52, %216, %c0_53, %c0_54] : memref<4x8x2x8x128xf32, #tpu.memory_space<vmem>>, vector<1x1x1x8x128xf32>
      %218 = vector.shape_cast %217 : vector<1x1x1x8x128xf32> to vector<8x128xf32>
      %219 = vector.shape_cast %194 : vector<8x128xf32> to vector<1x1x1x8x128xf32>
      tpu.vector_store %arg6[%c1_51, %c1_52, %216, %c0_53, %c0_54], %219 {strides = array<i32>} : memref<4x8x2x8x128xf32, #tpu.memory_space<vmem>>, vector<1x1x1x8x128xf32>,
      %c2_55 = arith.constant 2 : index
      %c1_56 = arith.constant 1 : index
      %220 = arith.index_cast %arg7 : i32 to index
      %c0_57 = arith.constant 0 : index
      %c0_58 = arith.constant 0 : index
      %221 = vector.load %arg6[%c2_55, %c1_56, %220, %c0_57, %c0_58] : memref<4x8x2x8x128xf32, #tpu.memory_space<vmem>>, vector<1x1x1x8x128xf32>
      %222 = vector.shape_cast %221 : vector<1x1x1x8x128xf32> to vector<8x128xf32>
      %223 = vector.shape_cast %201 : vector<8x128xf32> to vector<1x1x1x8x128xf32>
      tpu.vector_store %arg6[%c2_55, %c1_56, %220, %c0_57, %c0_58], %223 {strides = array<i32>} : memref<4x8x2x8x128xf32, #tpu.memory_space<vmem>>, vector<1x1x1x8x128xf32>,
      %c3_59 = arith.constant 3 : index
      %c1_60 = arith.constant 1 : index
      %224 = arith.index_cast %arg7 : i32 to index
      %c0_61 = arith.constant 0 : index
      %c0_62 = arith.constant 0 : index
      %225 = vector.load %arg6[%c3_59, %c1_60, %224, %c0_61, %c0_62] : memref<4x8x2x8x128xf32, #tpu.memory_space<vmem>>, vector<1x1x1x8x128xf32>
      %226 = vector.shape_cast %225 : vector<1x1x1x8x128xf32> to vector<8x128xf32>
      %227 = vector.shape_cast %211 : vector<8x128xf32> to vector<1x1x1x8x128xf32>
      tpu.vector_store %arg6[%c3_59, %c1_60, %224, %c0_61, %c0_62], %227 {strides = array<i32>} : memref<4x8x2x8x128xf32, #tpu.memory_space<vmem>>, vector<1x1x1x8x128xf32>,
      %c2_63 = arith.constant 2 : index
      %228 = arith.index_cast %arg7 : i32 to index
      %c0_64 = arith.constant 0 : index
      %c0_65 = arith.constant 0 : index
      %229 = vector.load %arg4[%c2_63, %228, %c0_64, %c0_65] : memref<14x2x8x128xf32, #tpu.memory_space<vmem>>, vector<1x1x8x128xf32>
      %230 = vector.shape_cast %229 : vector<1x1x8x128xf32> to vector<8x128xf32>
      %c2_66 = arith.constant 2 : index
      %231 = arith.index_cast %arg7 : i32 to index
      %c0_67 = arith.constant 0 : index
      %c0_68 = arith.constant 0 : index
      %232 = vector.load %arg5[%c2_66, %231, %c0_67, %c0_68] : memref<14x2x8x128xf32, #tpu.memory_space<vmem>>, vector<1x1x8x128xf32>
      %233 = vector.shape_cast %232 : vector<1x1x8x128xf32> to vector<8x128xf32>
      %234 = vector.broadcast %cst : f32 to vector<8x128xf32>
      %235 = arith.mulf %234, %233 : vector<8x128xf32>
      %236 = vector.broadcast %cst_0 : f32 to vector<8x128xf32>
      %237 = arith.maximumf %236, %194 : vector<8x128xf32>
      %238 = vector.broadcast %cst_0 : f32 to vector<8x128xf32>
      %239 = arith.maximumf %238, %201 : vector<8x128xf32>
      %240 = vector.broadcast %37 : f32 to vector<8x128xf32>
      %241 = arith.mulf %240, %237 : vector<8x128xf32>
      %242 = math.exp %241 : vector<8x128xf32>
      %cst_69 = arith.constant 1.000000e+00 : f32
      %243 = vector.broadcast %cst_69 : f32 to vector<8x128xf32>
      %244 = arith.subf %243, %242 : vector<8x128xf32>
      %245 = vector.broadcast %36 : f32 to vector<8x128xf32>
      %246 = arith.mulf %245, %244 : vector<8x128xf32>
      %247 = arith.mulf %246, %239 : vector<8x128xf32>
      %248 = vector.broadcast %8 : f32 to vector<8x128xf32>
      %249 = arith.addf %248, %187 : vector<8x128xf32>
      %250 = tpu.reciprocal %249 : vector<8x128xf32> -> vector<8x128xf32>
      %251 = arith.mulf %187, %250 : vector<8x128xf32>
      %252 = vector.broadcast %cst : f32 to vector<8x128xf32>
      %253 = arith.mulf %252, %251 : vector<8x128xf32>
      %254 = arith.mulf %253, %230 : vector<8x128xf32>
      %255 = arith.mulf %254, %237 : vector<8x128xf32>
      %256 = arith.subf %187, %255 : vector<8x128xf32>
      %257 = vector.broadcast %23 : f32 to vector<8x128xf32>
      %258 = arith.mulf %257, %247 : vector<8x128xf32>
      %259 = arith.addf %256, %258 : vector<8x128xf32>
      %260 = vector.broadcast %38 : f32 to vector<8x128xf32>
      %261 = arith.mulf %260, %194 : vector<8x128xf32>
      %262 = arith.addf %259, %261 : vector<8x128xf32>
      %263 = vector.broadcast %39 : f32 to vector<8x128xf32>
      %264 = arith.mulf %263, %201 : vector<8x128xf32>
      %265 = arith.addf %262, %264 : vector<8x128xf32>
      %266 = vector.broadcast %40 : f32 to vector<8x128xf32>
      %267 = arith.mulf %266, %211 : vector<8x128xf32>
      %268 = arith.addf %265, %267 : vector<8x128xf32>
      %269 = vector.broadcast %cst_1 : f32 to vector<8x128xf32>
      %270 = arith.subf %269, %187 : vector<8x128xf32>
      %271 = arith.mulf %235, %270 : vector<8x128xf32>
      %272 = arith.addf %268, %271 : vector<8x128xf32>
      %273 = arith.addf %194, %255 : vector<8x128xf32>
      %274 = arith.subf %273, %247 : vector<8x128xf32>
      %275 = arith.addf %38, %41 : f32
      %276 = vector.broadcast %275 : f32 to vector<8x128xf32>
      %277 = arith.addf %276, %235 : vector<8x128xf32>
      %278 = arith.mulf %277, %194 : vector<8x128xf32>
      %279 = arith.subf %274, %278 : vector<8x128xf32>
      %280 = vector.broadcast %26 : f32 to vector<8x128xf32>
      %281 = arith.mulf %280, %247 : vector<8x128xf32>
      %282 = arith.addf %201, %281 : vector<8x128xf32>
      %283 = vector.broadcast %39 : f32 to vector<8x128xf32>
      %284 = arith.addf %283, %235 : vector<8x128xf32>
      %285 = arith.mulf %284, %201 : vector<8x128xf32>
      %286 = arith.subf %282, %285 : vector<8x128xf32>
      %287 = vector.broadcast %41 : f32 to vector<8x128xf32>
      %288 = arith.mulf %287, %194 : vector<8x128xf32>
      %289 = arith.addf %211, %288 : vector<8x128xf32>
      %290 = vector.broadcast %45 : f32 to vector<8x128xf32>
      %291 = arith.mulf %290, %247 : vector<8x128xf32>
      %292 = arith.addf %289, %291 : vector<8x128xf32>
      %293 = vector.broadcast %43 : f32 to vector<8x128xf32>
      %294 = arith.addf %293, %235 : vector<8x128xf32>
      %295 = arith.mulf %294, %211 : vector<8x128xf32>
      %296 = arith.subf %292, %295 : vector<8x128xf32>
      %c3_70 = arith.constant 3 : index
      %297 = arith.index_cast %arg7 : i32 to index
      %c0_71 = arith.constant 0 : index
      %c0_72 = arith.constant 0 : index
      %298 = vector.load %arg4[%c3_70, %297, %c0_71, %c0_72] : memref<14x2x8x128xf32, #tpu.memory_space<vmem>>, vector<1x1x8x128xf32>
      %299 = vector.shape_cast %298 : vector<1x1x8x128xf32> to vector<8x128xf32>
      %c3_73 = arith.constant 3 : index
      %300 = arith.index_cast %arg7 : i32 to index
      %c0_74 = arith.constant 0 : index
      %c0_75 = arith.constant 0 : index
      %301 = vector.load %arg5[%c3_73, %300, %c0_74, %c0_75] : memref<14x2x8x128xf32, #tpu.memory_space<vmem>>, vector<1x1x8x128xf32>
      %302 = vector.shape_cast %301 : vector<1x1x8x128xf32> to vector<8x128xf32>
      %303 = vector.broadcast %cst : f32 to vector<8x128xf32>
      %304 = arith.mulf %303, %302 : vector<8x128xf32>
      %305 = vector.broadcast %cst_0 : f32 to vector<8x128xf32>
      %306 = arith.maximumf %305, %279 : vector<8x128xf32>
      %307 = vector.broadcast %cst_0 : f32 to vector<8x128xf32>
      %308 = arith.maximumf %307, %286 : vector<8x128xf32>
      %309 = vector.broadcast %37 : f32 to vector<8x128xf32>
      %310 = arith.mulf %309, %306 : vector<8x128xf32>
      %311 = math.exp %310 : vector<8x128xf32>
      %cst_76 = arith.constant 1.000000e+00 : f32
      %312 = vector.broadcast %cst_76 : f32 to vector<8x128xf32>
      %313 = arith.subf %312, %311 : vector<8x128xf32>
      %314 = vector.broadcast %36 : f32 to vector<8x128xf32>
      %315 = arith.mulf %314, %313 : vector<8x128xf32>
      %316 = arith.mulf %315, %308 : vector<8x128xf32>
      %317 = vector.broadcast %8 : f32 to vector<8x128xf32>
      %318 = arith.addf %317, %272 : vector<8x128xf32>
      %319 = tpu.reciprocal %318 : vector<8x128xf32> -> vector<8x128xf32>
      %320 = arith.mulf %272, %319 : vector<8x128xf32>
      %321 = vector.broadcast %cst : f32 to vector<8x128xf32>
      %322 = arith.mulf %321, %320 : vector<8x128xf32>
      %323 = arith.mulf %322, %299 : vector<8x128xf32>
      %324 = arith.mulf %323, %306 : vector<8x128xf32>
      %325 = arith.subf %272, %324 : vector<8x128xf32>
      %326 = vector.broadcast %23 : f32 to vector<8x128xf32>
      %327 = arith.mulf %326, %316 : vector<8x128xf32>
      %328 = arith.addf %325, %327 : vector<8x128xf32>
      %329 = vector.broadcast %38 : f32 to vector<8x128xf32>
      %330 = arith.mulf %329, %279 : vector<8x128xf32>
      %331 = arith.addf %328, %330 : vector<8x128xf32>
      %332 = vector.broadcast %39 : f32 to vector<8x128xf32>
      %333 = arith.mulf %332, %286 : vector<8x128xf32>
      %334 = arith.addf %331, %333 : vector<8x128xf32>
      %335 = vector.broadcast %40 : f32 to vector<8x128xf32>
      %336 = arith.mulf %335, %296 : vector<8x128xf32>
      %337 = arith.addf %334, %336 : vector<8x128xf32>
      %338 = vector.broadcast %cst_1 : f32 to vector<8x128xf32>
      %339 = arith.subf %338, %272 : vector<8x128xf32>
      %340 = arith.mulf %304, %339 : vector<8x128xf32>
      %341 = arith.addf %337, %340 : vector<8x128xf32>
      %342 = arith.addf %279, %324 : vector<8x128xf32>
      %343 = arith.subf %342, %316 : vector<8x128xf32>
      %344 = arith.addf %38, %41 : f32
      %345 = vector.broadcast %344 : f32 to vector<8x128xf32>
      %346 = arith.addf %345, %304 : vector<8x128xf32>
      %347 = arith.mulf %346, %279 : vector<8x128xf32>
      %348 = arith.subf %343, %347 : vector<8x128xf32>
      %349 = vector.broadcast %26 : f32 to vector<8x128xf32>
      %350 = arith.mulf %349, %316 : vector<8x128xf32>
      %351 = arith.addf %286, %350 : vector<8x128xf32>
      %352 = vector.broadcast %39 : f32 to vector<8x128xf32>
      %353 = arith.addf %352, %304 : vector<8x128xf32>
      %354 = arith.mulf %353, %286 : vector<8x128xf32>
      %355 = arith.subf %351, %354 : vector<8x128xf32>
      %356 = vector.broadcast %41 : f32 to vector<8x128xf32>
      %357 = arith.mulf %356, %279 : vector<8x128xf32>
      %358 = arith.addf %296, %357 : vector<8x128xf32>
      %359 = vector.broadcast %45 : f32 to vector<8x128xf32>
      %360 = arith.mulf %359, %316 : vector<8x128xf32>
      %361 = arith.addf %358, %360 : vector<8x128xf32>
      %362 = vector.broadcast %43 : f32 to vector<8x128xf32>
      %363 = arith.addf %362, %304 : vector<8x128xf32>
      %364 = arith.mulf %363, %296 : vector<8x128xf32>
      %365 = arith.subf %361, %364 : vector<8x128xf32>
      %c0_77 = arith.constant 0 : index
      %c2_78 = arith.constant 2 : index
      %366 = arith.index_cast %arg7 : i32 to index
      %c0_79 = arith.constant 0 : index
      %c0_80 = arith.constant 0 : index
      %367 = vector.load %arg6[%c0_77, %c2_78, %366, %c0_79, %c0_80] : memref<4x8x2x8x128xf32, #tpu.memory_space<vmem>>, vector<1x1x1x8x128xf32>
      %368 = vector.shape_cast %367 : vector<1x1x1x8x128xf32> to vector<8x128xf32>
      %369 = vector.shape_cast %341 : vector<8x128xf32> to vector<1x1x1x8x128xf32>
      tpu.vector_store %arg6[%c0_77, %c2_78, %366, %c0_79, %c0_80], %369 {strides = array<i32>} : memref<4x8x2x8x128xf32, #tpu.memory_space<vmem>>, vector<1x1x1x8x128xf32>,
      %c1_81 = arith.constant 1 : index
      %c2_82 = arith.constant 2 : index
      %370 = arith.index_cast %arg7 : i32 to index
      %c0_83 = arith.constant 0 : index
      %c0_84 = arith.constant 0 : index
      %371 = vector.load %arg6[%c1_81, %c2_82, %370, %c0_83, %c0_84] : memref<4x8x2x8x128xf32, #tpu.memory_space<vmem>>, vector<1x1x1x8x128xf32>
      %372 = vector.shape_cast %371 : vector<1x1x1x8x128xf32> to vector<8x128xf32>
      %373 = vector.shape_cast %348 : vector<8x128xf32> to vector<1x1x1x8x128xf32>
      tpu.vector_store %arg6[%c1_81, %c2_82, %370, %c0_83, %c0_84], %373 {strides = array<i32>} : memref<4x8x2x8x128xf32, #tpu.memory_space<vmem>>, vector<1x1x1x8x128xf32>,
      %c2_85 = arith.constant 2 : index
      %c2_86 = arith.constant 2 : index
      %374 = arith.index_cast %arg7 : i32 to index
      %c0_87 = arith.constant 0 : index
      %c0_88 = arith.constant 0 : index
      %375 = vector.load %arg6[%c2_85, %c2_86, %374, %c0_87, %c0_88] : memref<4x8x2x8x128xf32, #tpu.memory_space<vmem>>, vector<1x1x1x8x128xf32>
      %376 = vector.shape_cast %375 : vector<1x1x1x8x128xf32> to vector<8x128xf32>
      %377 = vector.shape_cast %355 : vector<8x128xf32> to vector<1x1x1x8x128xf32>
      tpu.vector_store %arg6[%c2_85, %c2_86, %374, %c0_87, %c0_88], %377 {strides = array<i32>} : memref<4x8x2x8x128xf32, #tpu.memory_space<vmem>>, vector<1x1x1x8x128xf32>,
      %c3_89 = arith.constant 3 : index
      %c2_90 = arith.constant 2 : index
      %378 = arith.index_cast %arg7 : i32 to index
      %c0_91 = arith.constant 0 : index
      %c0_92 = arith.constant 0 : index
      %379 = vector.load %arg6[%c3_89, %c2_90, %378, %c0_91, %c0_92] : memref<4x8x2x8x128xf32, #tpu.memory_space<vmem>>, vector<1x1x1x8x128xf32>
      %380 = vector.shape_cast %379 : vector<1x1x1x8x128xf32> to vector<8x128xf32>
      %381 = vector.shape_cast %365 : vector<8x128xf32> to vector<1x1x1x8x128xf32>
      tpu.vector_store %arg6[%c3_89, %c2_90, %378, %c0_91, %c0_92], %381 {strides = array<i32>} : memref<4x8x2x8x128xf32, #tpu.memory_space<vmem>>, vector<1x1x1x8x128xf32>,
      %c4 = arith.constant 4 : index
      %382 = arith.index_cast %arg7 : i32 to index
      %c0_93 = arith.constant 0 : index
      %c0_94 = arith.constant 0 : index
      %383 = vector.load %arg4[%c4, %382, %c0_93, %c0_94] : memref<14x2x8x128xf32, #tpu.memory_space<vmem>>, vector<1x1x8x128xf32>
      %384 = vector.shape_cast %383 : vector<1x1x8x128xf32> to vector<8x128xf32>
      %c4_95 = arith.constant 4 : index
      %385 = arith.index_cast %arg7 : i32 to index
      %c0_96 = arith.constant 0 : index
      %c0_97 = arith.constant 0 : index
      %386 = vector.load %arg5[%c4_95, %385, %c0_96, %c0_97] : memref<14x2x8x128xf32, #tpu.memory_space<vmem>>, vector<1x1x8x128xf32>
      %387 = vector.shape_cast %386 : vector<1x1x8x128xf32> to vector<8x128xf32>
      %388 = vector.broadcast %cst : f32 to vector<8x128xf32>
      %389 = arith.mulf %388, %387 : vector<8x128xf32>
      %390 = vector.broadcast %cst_0 : f32 to vector<8x128xf32>
      %391 = arith.maximumf %390, %348 : vector<8x128xf32>
      %392 = vector.broadcast %cst_0 : f32 to vector<8x128xf32>
      %393 = arith.maximumf %392, %355 : vector<8x128xf32>
      %394 = vector.broadcast %37 : f32 to vector<8x128xf32>
      %395 = arith.mulf %394, %391 : vector<8x128xf32>
      %396 = math.exp %395 : vector<8x128xf32>
      %cst_98 = arith.constant 1.000000e+00 : f32
      %397 = vector.broadcast %cst_98 : f32 to vector<8x128xf32>
      %398 = arith.subf %397, %396 : vector<8x128xf32>
      %399 = vector.broadcast %36 : f32 to vector<8x128xf32>
      %400 = arith.mulf %399, %398 : vector<8x128xf32>
      %401 = arith.mulf %400, %393 : vector<8x128xf32>
      %402 = vector.broadcast %8 : f32 to vector<8x128xf32>
      %403 = arith.addf %402, %341 : vector<8x128xf32>
      %404 = tpu.reciprocal %403 : vector<8x128xf32> -> vector<8x128xf32>
      %405 = arith.mulf %341, %404 : vector<8x128xf32>
      %406 = vector.broadcast %cst : f32 to vector<8x128xf32>
      %407 = arith.mulf %406, %405 : vector<8x128xf32>
      %408 = arith.mulf %407, %384 : vector<8x128xf32>
      %409 = arith.mulf %408, %391 : vector<8x128xf32>
      %410 = arith.subf %341, %409 : vector<8x128xf32>
      %411 = vector.broadcast %23 : f32 to vector<8x128xf32>
      %412 = arith.mulf %411, %401 : vector<8x128xf32>
      %413 = arith.addf %410, %412 : vector<8x128xf32>
      %414 = vector.broadcast %38 : f32 to vector<8x128xf32>
      %415 = arith.mulf %414, %348 : vector<8x128xf32>
      %416 = arith.addf %413, %415 : vector<8x128xf32>
      %417 = vector.broadcast %39 : f32 to vector<8x128xf32>
      %418 = arith.mulf %417, %355 : vector<8x128xf32>
      %419 = arith.addf %416, %418 : vector<8x128xf32>
      %420 = vector.broadcast %40 : f32 to vector<8x128xf32>
      %421 = arith.mulf %420, %365 : vector<8x128xf32>
      %422 = arith.addf %419, %421 : vector<8x128xf32>
      %423 = vector.broadcast %cst_1 : f32 to vector<8x128xf32>
      %424 = arith.subf %423, %341 : vector<8x128xf32>
      %425 = arith.mulf %389, %424 : vector<8x128xf32>
      %426 = arith.addf %422, %425 : vector<8x128xf32>
      %427 = arith.addf %348, %409 : vector<8x128xf32>
      %428 = arith.subf %427, %401 : vector<8x128xf32>
      %429 = arith.addf %38, %41 : f32
      %430 = vector.broadcast %429 : f32 to vector<8x128xf32>
      %431 = arith.addf %430, %389 : vector<8x128xf32>
      %432 = arith.mulf %431, %348 : vector<8x128xf32>
      %433 = arith.subf %428, %432 : vector<8x128xf32>
      %434 = vector.broadcast %26 : f32 to vector<8x128xf32>
      %435 = arith.mulf %434, %401 : vector<8x128xf32>
      %436 = arith.addf %355, %435 : vector<8x128xf32>
      %437 = vector.broadcast %39 : f32 to vector<8x128xf32>
      %438 = arith.addf %437, %389 : vector<8x128xf32>
      %439 = arith.mulf %438, %355 : vector<8x128xf32>
      %440 = arith.subf %436, %439 : vector<8x128xf32>
      %441 = vector.broadcast %41 : f32 to vector<8x128xf32>
      %442 = arith.mulf %441, %348 : vector<8x128xf32>
      %443 = arith.addf %365, %442 : vector<8x128xf32>
      %444 = vector.broadcast %45 : f32 to vector<8x128xf32>
      %445 = arith.mulf %444, %401 : vector<8x128xf32>
      %446 = arith.addf %443, %445 : vector<8x128xf32>
      %447 = vector.broadcast %43 : f32 to vector<8x128xf32>
      %448 = arith.addf %447, %389 : vector<8x128xf32>
      %449 = arith.mulf %448, %365 : vector<8x128xf32>
      %450 = arith.subf %446, %449 : vector<8x128xf32>
      %c5 = arith.constant 5 : index
      %451 = arith.index_cast %arg7 : i32 to index
      %c0_99 = arith.constant 0 : index
      %c0_100 = arith.constant 0 : index
      %452 = vector.load %arg4[%c5, %451, %c0_99, %c0_100] : memref<14x2x8x128xf32, #tpu.memory_space<vmem>>, vector<1x1x8x128xf32>
      %453 = vector.shape_cast %452 : vector<1x1x8x128xf32> to vector<8x128xf32>
      %c5_101 = arith.constant 5 : index
      %454 = arith.index_cast %arg7 : i32 to index
      %c0_102 = arith.constant 0 : index
      %c0_103 = arith.constant 0 : index
      %455 = vector.load %arg5[%c5_101, %454, %c0_102, %c0_103] : memref<14x2x8x128xf32, #tpu.memory_space<vmem>>, vector<1x1x8x128xf32>
      %456 = vector.shape_cast %455 : vector<1x1x8x128xf32> to vector<8x128xf32>
      %457 = vector.broadcast %cst : f32 to vector<8x128xf32>
      %458 = arith.mulf %457, %456 : vector<8x128xf32>
      %459 = vector.broadcast %cst_0 : f32 to vector<8x128xf32>
      %460 = arith.maximumf %459, %433 : vector<8x128xf32>
      %461 = vector.broadcast %cst_0 : f32 to vector<8x128xf32>
      %462 = arith.maximumf %461, %440 : vector<8x128xf32>
      %463 = vector.broadcast %37 : f32 to vector<8x128xf32>
      %464 = arith.mulf %463, %460 : vector<8x128xf32>
      %465 = math.exp %464 : vector<8x128xf32>
      %cst_104 = arith.constant 1.000000e+00 : f32
      %466 = vector.broadcast %cst_104 : f32 to vector<8x128xf32>
      %467 = arith.subf %466, %465 : vector<8x128xf32>
      %468 = vector.broadcast %36 : f32 to vector<8x128xf32>
      %469 = arith.mulf %468, %467 : vector<8x128xf32>
      %470 = arith.mulf %469, %462 : vector<8x128xf32>
      %471 = vector.broadcast %8 : f32 to vector<8x128xf32>
      %472 = arith.addf %471, %426 : vector<8x128xf32>
      %473 = tpu.reciprocal %472 : vector<8x128xf32> -> vector<8x128xf32>
      %474 = arith.mulf %426, %473 : vector<8x128xf32>
      %475 = vector.broadcast %cst : f32 to vector<8x128xf32>
      %476 = arith.mulf %475, %474 : vector<8x128xf32>
      %477 = arith.mulf %476, %453 : vector<8x128xf32>
      %478 = arith.mulf %477, %460 : vector<8x128xf32>
      %479 = arith.subf %426, %478 : vector<8x128xf32>
      %480 = vector.broadcast %23 : f32 to vector<8x128xf32>
      %481 = arith.mulf %480, %470 : vector<8x128xf32>
      %482 = arith.addf %479, %481 : vector<8x128xf32>
      %483 = vector.broadcast %38 : f32 to vector<8x128xf32>
      %484 = arith.mulf %483, %433 : vector<8x128xf32>
      %485 = arith.addf %482, %484 : vector<8x128xf32>
      %486 = vector.broadcast %39 : f32 to vector<8x128xf32>
      %487 = arith.mulf %486, %440 : vector<8x128xf32>
      %488 = arith.addf %485, %487 : vector<8x128xf32>
      %489 = vector.broadcast %40 : f32 to vector<8x128xf32>
      %490 = arith.mulf %489, %450 : vector<8x128xf32>
      %491 = arith.addf %488, %490 : vector<8x128xf32>
      %492 = vector.broadcast %cst_1 : f32 to vector<8x128xf32>
      %493 = arith.subf %492, %426 : vector<8x128xf32>
      %494 = arith.mulf %458, %493 : vector<8x128xf32>
      %495 = arith.addf %491, %494 : vector<8x128xf32>
      %496 = arith.addf %433, %478 : vector<8x128xf32>
      %497 = arith.subf %496, %470 : vector<8x128xf32>
      %498 = arith.addf %38, %41 : f32
      %499 = vector.broadcast %498 : f32 to vector<8x128xf32>
      %500 = arith.addf %499, %458 : vector<8x128xf32>
      %501 = arith.mulf %500, %433 : vector<8x128xf32>
      %502 = arith.subf %497, %501 : vector<8x128xf32>
      %503 = vector.broadcast %26 : f32 to vector<8x128xf32>
      %504 = arith.mulf %503, %470 : vector<8x128xf32>
      %505 = arith.addf %440, %504 : vector<8x128xf32>
      %506 = vector.broadcast %39 : f32 to vector<8x128xf32>
      %507 = arith.addf %506, %458 : vector<8x128xf32>
      %508 = arith.mulf %507, %440 : vector<8x128xf32>
      %509 = arith.subf %505, %508 : vector<8x128xf32>
      %510 = vector.broadcast %41 : f32 to vector<8x128xf32>
      %511 = arith.mulf %510, %433 : vector<8x128xf32>
      %512 = arith.addf %450, %511 : vector<8x128xf32>
      %513 = vector.broadcast %45 : f32 to vector<8x128xf32>
      %514 = arith.mulf %513, %470 : vector<8x128xf32>
      %515 = arith.addf %512, %514 : vector<8x128xf32>
      %516 = vector.broadcast %43 : f32 to vector<8x128xf32>
      %517 = arith.addf %516, %458 : vector<8x128xf32>
      %518 = arith.mulf %517, %450 : vector<8x128xf32>
      %519 = arith.subf %515, %518 : vector<8x128xf32>
      %c0_105 = arith.constant 0 : index
      %c3_106 = arith.constant 3 : index
      %520 = arith.index_cast %arg7 : i32 to index
      %c0_107 = arith.constant 0 : index
      %c0_108 = arith.constant 0 : index
      %521 = vector.load %arg6[%c0_105, %c3_106, %520, %c0_107, %c0_108] : memref<4x8x2x8x128xf32, #tpu.memory_space<vmem>>, vector<1x1x1x8x128xf32>
      %522 = vector.shape_cast %521 : vector<1x1x1x8x128xf32> to vector<8x128xf32>
      %523 = vector.shape_cast %495 : vector<8x128xf32> to vector<1x1x1x8x128xf32>
      tpu.vector_store %arg6[%c0_105, %c3_106, %520, %c0_107, %c0_108], %523 {strides = array<i32>} : memref<4x8x2x8x128xf32, #tpu.memory_space<vmem>>, vector<1x1x1x8x128xf32>,
      %c1_109 = arith.constant 1 : index
      %c3_110 = arith.constant 3 : index
      %524 = arith.index_cast %arg7 : i32 to index
      %c0_111 = arith.constant 0 : index
      %c0_112 = arith.constant 0 : index
      %525 = vector.load %arg6[%c1_109, %c3_110, %524, %c0_111, %c0_112] : memref<4x8x2x8x128xf32, #tpu.memory_space<vmem>>, vector<1x1x1x8x128xf32>
      %526 = vector.shape_cast %525 : vector<1x1x1x8x128xf32> to vector<8x128xf32>
      %527 = vector.shape_cast %502 : vector<8x128xf32> to vector<1x1x1x8x128xf32>
      tpu.vector_store %arg6[%c1_109, %c3_110, %524, %c0_111, %c0_112], %527 {strides = array<i32>} : memref<4x8x2x8x128xf32, #tpu.memory_space<vmem>>, vector<1x1x1x8x128xf32>,
      %c2_113 = arith.constant 2 : index
      %c3_114 = arith.constant 3 : index
      %528 = arith.index_cast %arg7 : i32 to index
      %c0_115 = arith.constant 0 : index
      %c0_116 = arith.constant 0 : index
      %529 = vector.load %arg6[%c2_113, %c3_114, %528, %c0_115, %c0_116] : memref<4x8x2x8x128xf32, #tpu.memory_space<vmem>>, vector<1x1x1x8x128xf32>
      %530 = vector.shape_cast %529 : vector<1x1x1x8x128xf32> to vector<8x128xf32>
      %531 = vector.shape_cast %509 : vector<8x128xf32> to vector<1x1x1x8x128xf32>
      tpu.vector_store %arg6[%c2_113, %c3_114, %528, %c0_115, %c0_116], %531 {strides = array<i32>} : memref<4x8x2x8x128xf32, #tpu.memory_space<vmem>>, vector<1x1x1x8x128xf32>,
      %c3_117 = arith.constant 3 : index
      %c3_118 = arith.constant 3 : index
      %532 = arith.index_cast %arg7 : i32 to index
      %c0_119 = arith.constant 0 : index
      %c0_120 = arith.constant 0 : index
      %533 = vector.load %arg6[%c3_117, %c3_118, %532, %c0_119, %c0_120] : memref<4x8x2x8x128xf32, #tpu.memory_space<vmem>>, vector<1x1x1x8x128xf32>
      %534 = vector.shape_cast %533 : vector<1x1x1x8x128xf32> to vector<8x128xf32>
      %535 = vector.shape_cast %519 : vector<8x128xf32> to vector<1x1x1x8x128xf32>
      tpu.vector_store %arg6[%c3_117, %c3_118, %532, %c0_119, %c0_120], %535 {strides = array<i32>} : memref<4x8x2x8x128xf32, #tpu.memory_space<vmem>>, vector<1x1x1x8x128xf32>,
      %c6 = arith.constant 6 : index
      %536 = arith.index_cast %arg7 : i32 to index
      %c0_121 = arith.constant 0 : index
      %c0_122 = arith.constant 0 : index
      %537 = vector.load %arg4[%c6, %536, %c0_121, %c0_122] : memref<14x2x8x128xf32, #tpu.memory_space<vmem>>, vector<1x1x8x128xf32>
      %538 = vector.shape_cast %537 : vector<1x1x8x128xf32> to vector<8x128xf32>
      %c6_123 = arith.constant 6 : index
      %539 = arith.index_cast %arg7 : i32 to index
      %c0_124 = arith.constant 0 : index
      %c0_125 = arith.constant 0 : index
      %540 = vector.load %arg5[%c6_123, %539, %c0_124, %c0_125] : memref<14x2x8x128xf32, #tpu.memory_space<vmem>>, vector<1x1x8x128xf32>
      %541 = vector.shape_cast %540 : vector<1x1x8x128xf32> to vector<8x128xf32>
      %542 = vector.broadcast %cst : f32 to vector<8x128xf32>
      %543 = arith.mulf %542, %541 : vector<8x128xf32>
      %544 = vector.broadcast %cst_0 : f32 to vector<8x128xf32>
      %545 = arith.maximumf %544, %502 : vector<8x128xf32>
      %546 = vector.broadcast %cst_0 : f32 to vector<8x128xf32>
      %547 = arith.maximumf %546, %509 : vector<8x128xf32>
      %548 = vector.broadcast %37 : f32 to vector<8x128xf32>
      %549 = arith.mulf %548, %545 : vector<8x128xf32>
      %550 = math.exp %549 : vector<8x128xf32>
      %cst_126 = arith.constant 1.000000e+00 : f32
      %551 = vector.broadcast %cst_126 : f32 to vector<8x128xf32>
      %552 = arith.subf %551, %550 : vector<8x128xf32>
      %553 = vector.broadcast %36 : f32 to vector<8x128xf32>
      %554 = arith.mulf %553, %552 : vector<8x128xf32>
      %555 = arith.mulf %554, %547 : vector<8x128xf32>
      %556 = vector.broadcast %8 : f32 to vector<8x128xf32>
      %557 = arith.addf %556, %495 : vector<8x128xf32>
      %558 = tpu.reciprocal %557 : vector<8x128xf32> -> vector<8x128xf32>
      %559 = arith.mulf %495, %558 : vector<8x128xf32>
      %560 = vector.broadcast %cst : f32 to vector<8x128xf32>
      %561 = arith.mulf %560, %559 : vector<8x128xf32>
      %562 = arith.mulf %561, %538 : vector<8x128xf32>
      %563 = arith.mulf %562, %545 : vector<8x128xf32>
      %564 = arith.subf %495, %563 : vector<8x128xf32>
      %565 = vector.broadcast %23 : f32 to vector<8x128xf32>
      %566 = arith.mulf %565, %555 : vector<8x128xf32>
      %567 = arith.addf %564, %566 : vector<8x128xf32>
      %568 = vector.broadcast %38 : f32 to vector<8x128xf32>
      %569 = arith.mulf %568, %502 : vector<8x128xf32>
      %570 = arith.addf %567, %569 : vector<8x128xf32>
      %571 = vector.broadcast %39 : f32 to vector<8x128xf32>
      %572 = arith.mulf %571, %509 : vector<8x128xf32>
      %573 = arith.addf %570, %572 : vector<8x128xf32>
      %574 = vector.broadcast %40 : f32 to vector<8x128xf32>
      %575 = arith.mulf %574, %519 : vector<8x128xf32>
      %576 = arith.addf %573, %575 : vector<8x128xf32>
      %577 = vector.broadcast %cst_1 : f32 to vector<8x128xf32>
      %578 = arith.subf %577, %495 : vector<8x128xf32>
      %579 = arith.mulf %543, %578 : vector<8x128xf32>
      %580 = arith.addf %576, %579 : vector<8x128xf32>
      %581 = arith.addf %502, %563 : vector<8x128xf32>
      %582 = arith.subf %581, %555 : vector<8x128xf32>
      %583 = arith.addf %38, %41 : f32
      %584 = vector.broadcast %583 : f32 to vector<8x128xf32>
      %585 = arith.addf %584, %543 : vector<8x128xf32>
      %586 = arith.mulf %585, %502 : vector<8x128xf32>
      %587 = arith.subf %582, %586 : vector<8x128xf32>
      %588 = vector.broadcast %26 : f32 to vector<8x128xf32>
      %589 = arith.mulf %588, %555 : vector<8x128xf32>
      %590 = arith.addf %509, %589 : vector<8x128xf32>
      %591 = vector.broadcast %39 : f32 to vector<8x128xf32>
      %592 = arith.addf %591, %543 : vector<8x128xf32>
      %593 = arith.mulf %592, %509 : vector<8x128xf32>
      %594 = arith.subf %590, %593 : vector<8x128xf32>
      %595 = vector.broadcast %41 : f32 to vector<8x128xf32>
      %596 = arith.mulf %595, %502 : vector<8x128xf32>
      %597 = arith.addf %519, %596 : vector<8x128xf32>
      %598 = vector.broadcast %45 : f32 to vector<8x128xf32>
      %599 = arith.mulf %598, %555 : vector<8x128xf32>
      %600 = arith.addf %597, %599 : vector<8x128xf32>
      %601 = vector.broadcast %43 : f32 to vector<8x128xf32>
      %602 = arith.addf %601, %543 : vector<8x128xf32>
      %603 = arith.mulf %602, %519 : vector<8x128xf32>
      %604 = arith.subf %600, %603 : vector<8x128xf32>
      %c7 = arith.constant 7 : index
      %605 = arith.index_cast %arg7 : i32 to index
      %c0_127 = arith.constant 0 : index
      %c0_128 = arith.constant 0 : index
      %606 = vector.load %arg4[%c7, %605, %c0_127, %c0_128] : memref<14x2x8x128xf32, #tpu.memory_space<vmem>>, vector<1x1x8x128xf32>
      %607 = vector.shape_cast %606 : vector<1x1x8x128xf32> to vector<8x128xf32>
      %c7_129 = arith.constant 7 : index
      %608 = arith.index_cast %arg7 : i32 to index
      %c0_130 = arith.constant 0 : index
      %c0_131 = arith.constant 0 : index
      %609 = vector.load %arg5[%c7_129, %608, %c0_130, %c0_131] : memref<14x2x8x128xf32, #tpu.memory_space<vmem>>, vector<1x1x8x128xf32>
      %610 = vector.shape_cast %609 : vector<1x1x8x128xf32> to vector<8x128xf32>
      %611 = vector.broadcast %cst : f32 to vector<8x128xf32>
      %612 = arith.mulf %611, %610 : vector<8x128xf32>
      %613 = vector.broadcast %cst_0 : f32 to vector<8x128xf32>
      %614 = arith.maximumf %613, %587 : vector<8x128xf32>
      %615 = vector.broadcast %cst_0 : f32 to vector<8x128xf32>
      %616 = arith.maximumf %615, %594 : vector<8x128xf32>
      %617 = vector.broadcast %37 : f32 to vector<8x128xf32>
      %618 = arith.mulf %617, %614 : vector<8x128xf32>
      %619 = math.exp %618 : vector<8x128xf32>
      %cst_132 = arith.constant 1.000000e+00 : f32
      %620 = vector.broadcast %cst_132 : f32 to vector<8x128xf32>
      %621 = arith.subf %620, %619 : vector<8x128xf32>
      %622 = vector.broadcast %36 : f32 to vector<8x128xf32>
      %623 = arith.mulf %622, %621 : vector<8x128xf32>
      %624 = arith.mulf %623, %616 : vector<8x128xf32>
      %625 = vector.broadcast %8 : f32 to vector<8x128xf32>
      %626 = arith.addf %625, %580 : vector<8x128xf32>
      %627 = tpu.reciprocal %626 : vector<8x128xf32> -> vector<8x128xf32>
      %628 = arith.mulf %580, %627 : vector<8x128xf32>
      %629 = vector.broadcast %cst : f32 to vector<8x128xf32>
      %630 = arith.mulf %629, %628 : vector<8x128xf32>
      %631 = arith.mulf %630, %607 : vector<8x128xf32>
      %632 = arith.mulf %631, %614 : vector<8x128xf32>
      %633 = arith.subf %580, %632 : vector<8x128xf32>
      %634 = vector.broadcast %23 : f32 to vector<8x128xf32>
      %635 = arith.mulf %634, %624 : vector<8x128xf32>
      %636 = arith.addf %633, %635 : vector<8x128xf32>
      %637 = vector.broadcast %38 : f32 to vector<8x128xf32>
      %638 = arith.mulf %637, %587 : vector<8x128xf32>
      %639 = arith.addf %636, %638 : vector<8x128xf32>
      %640 = vector.broadcast %39 : f32 to vector<8x128xf32>
      %641 = arith.mulf %640, %594 : vector<8x128xf32>
      %642 = arith.addf %639, %641 : vector<8x128xf32>
      %643 = vector.broadcast %40 : f32 to vector<8x128xf32>
      %644 = arith.mulf %643, %604 : vector<8x128xf32>
      %645 = arith.addf %642, %644 : vector<8x128xf32>
      %646 = vector.broadcast %cst_1 : f32 to vector<8x128xf32>
      %647 = arith.subf %646, %580 : vector<8x128xf32>
      %648 = arith.mulf %612, %647 : vector<8x128xf32>
      %649 = arith.addf %645, %648 : vector<8x128xf32>
      %650 = arith.addf %587, %632 : vector<8x128xf32>
      %651 = arith.subf %650, %624 : vector<8x128xf32>
      %652 = arith.addf %38, %41 : f32
      %653 = vector.broadcast %652 : f32 to vector<8x128xf32>
      %654 = arith.addf %653, %612 : vector<8x128xf32>
      %655 = arith.mulf %654, %587 : vector<8x128xf32>
      %656 = arith.subf %651, %655 : vector<8x128xf32>
      %657 = vector.broadcast %26 : f32 to vector<8x128xf32>
      %658 = arith.mulf %657, %624 : vector<8x128xf32>
      %659 = arith.addf %594, %658 : vector<8x128xf32>
      %660 = vector.broadcast %39 : f32 to vector<8x128xf32>
      %661 = arith.addf %660, %612 : vector<8x128xf32>
      %662 = arith.mulf %661, %594 : vector<8x128xf32>
      %663 = arith.subf %659, %662 : vector<8x128xf32>
      %664 = vector.broadcast %41 : f32 to vector<8x128xf32>
      %665 = arith.mulf %664, %587 : vector<8x128xf32>
      %666 = arith.addf %604, %665 : vector<8x128xf32>
      %667 = vector.broadcast %45 : f32 to vector<8x128xf32>
      %668 = arith.mulf %667, %624 : vector<8x128xf32>
      %669 = arith.addf %666, %668 : vector<8x128xf32>
      %670 = vector.broadcast %43 : f32 to vector<8x128xf32>
      %671 = arith.addf %670, %612 : vector<8x128xf32>
      %672 = arith.mulf %671, %604 : vector<8x128xf32>
      %673 = arith.subf %669, %672 : vector<8x128xf32>
      %c0_133 = arith.constant 0 : index
      %c4_134 = arith.constant 4 : index
      %674 = arith.index_cast %arg7 : i32 to index
      %c0_135 = arith.constant 0 : index
      %c0_136 = arith.constant 0 : index
      %675 = vector.load %arg6[%c0_133, %c4_134, %674, %c0_135, %c0_136] : memref<4x8x2x8x128xf32, #tpu.memory_space<vmem>>, vector<1x1x1x8x128xf32>
      %676 = vector.shape_cast %675 : vector<1x1x1x8x128xf32> to vector<8x128xf32>
      %677 = vector.shape_cast %649 : vector<8x128xf32> to vector<1x1x1x8x128xf32>
      tpu.vector_store %arg6[%c0_133, %c4_134, %674, %c0_135, %c0_136], %677 {strides = array<i32>} : memref<4x8x2x8x128xf32, #tpu.memory_space<vmem>>, vector<1x1x1x8x128xf32>,
      %c1_137 = arith.constant 1 : index
      %c4_138 = arith.constant 4 : index
      %678 = arith.index_cast %arg7 : i32 to index
      %c0_139 = arith.constant 0 : index
      %c0_140 = arith.constant 0 : index
      %679 = vector.load %arg6[%c1_137, %c4_138, %678, %c0_139, %c0_140] : memref<4x8x2x8x128xf32, #tpu.memory_space<vmem>>, vector<1x1x1x8x128xf32>
      %680 = vector.shape_cast %679 : vector<1x1x1x8x128xf32> to vector<8x128xf32>
      %681 = vector.shape_cast %656 : vector<8x128xf32> to vector<1x1x1x8x128xf32>
      tpu.vector_store %arg6[%c1_137, %c4_138, %678, %c0_139, %c0_140], %681 {strides = array<i32>} : memref<4x8x2x8x128xf32, #tpu.memory_space<vmem>>, vector<1x1x1x8x128xf32>,
      %c2_141 = arith.constant 2 : index
      %c4_142 = arith.constant 4 : index
      %682 = arith.index_cast %arg7 : i32 to index
      %c0_143 = arith.constant 0 : index
      %c0_144 = arith.constant 0 : index
      %683 = vector.load %arg6[%c2_141, %c4_142, %682, %c0_143, %c0_144] : memref<4x8x2x8x128xf32, #tpu.memory_space<vmem>>, vector<1x1x1x8x128xf32>
      %684 = vector.shape_cast %683 : vector<1x1x1x8x128xf32> to vector<8x128xf32>
      %685 = vector.shape_cast %663 : vector<8x128xf32> to vector<1x1x1x8x128xf32>
      tpu.vector_store %arg6[%c2_141, %c4_142, %682, %c0_143, %c0_144], %685 {strides = array<i32>} : memref<4x8x2x8x128xf32, #tpu.memory_space<vmem>>, vector<1x1x1x8x128xf32>,
      %c3_145 = arith.constant 3 : index
      %c4_146 = arith.constant 4 : index
      %686 = arith.index_cast %arg7 : i32 to index
      %c0_147 = arith.constant 0 : index
      %c0_148 = arith.constant 0 : index
      %687 = vector.load %arg6[%c3_145, %c4_146, %686, %c0_147, %c0_148] : memref<4x8x2x8x128xf32, #tpu.memory_space<vmem>>, vector<1x1x1x8x128xf32>
      %688 = vector.shape_cast %687 : vector<1x1x1x8x128xf32> to vector<8x128xf32>
      %689 = vector.shape_cast %673 : vector<8x128xf32> to vector<1x1x1x8x128xf32>
      tpu.vector_store %arg6[%c3_145, %c4_146, %686, %c0_147, %c0_148], %689 {strides = array<i32>} : memref<4x8x2x8x128xf32, #tpu.memory_space<vmem>>, vector<1x1x1x8x128xf32>,
      %c8 = arith.constant 8 : index
      %690 = arith.index_cast %arg7 : i32 to index
      %c0_149 = arith.constant 0 : index
      %c0_150 = arith.constant 0 : index
      %691 = vector.load %arg4[%c8, %690, %c0_149, %c0_150] : memref<14x2x8x128xf32, #tpu.memory_space<vmem>>, vector<1x1x8x128xf32>
      %692 = vector.shape_cast %691 : vector<1x1x8x128xf32> to vector<8x128xf32>
      %c8_151 = arith.constant 8 : index
      %693 = arith.index_cast %arg7 : i32 to index
      %c0_152 = arith.constant 0 : index
      %c0_153 = arith.constant 0 : index
      %694 = vector.load %arg5[%c8_151, %693, %c0_152, %c0_153] : memref<14x2x8x128xf32, #tpu.memory_space<vmem>>, vector<1x1x8x128xf32>
      %695 = vector.shape_cast %694 : vector<1x1x8x128xf32> to vector<8x128xf32>
      %696 = vector.broadcast %cst : f32 to vector<8x128xf32>
      %697 = arith.mulf %696, %695 : vector<8x128xf32>
      %698 = vector.broadcast %cst_0 : f32 to vector<8x128xf32>
      %699 = arith.maximumf %698, %656 : vector<8x128xf32>
      %700 = vector.broadcast %cst_0 : f32 to vector<8x128xf32>
      %701 = arith.maximumf %700, %663 : vector<8x128xf32>
      %702 = vector.broadcast %37 : f32 to vector<8x128xf32>
      %703 = arith.mulf %702, %699 : vector<8x128xf32>
      %704 = math.exp %703 : vector<8x128xf32>
      %cst_154 = arith.constant 1.000000e+00 : f32
      %705 = vector.broadcast %cst_154 : f32 to vector<8x128xf32>
      %706 = arith.subf %705, %704 : vector<8x128xf32>
      %707 = vector.broadcast %36 : f32 to vector<8x128xf32>
      %708 = arith.mulf %707, %706 : vector<8x128xf32>
      %709 = arith.mulf %708, %701 : vector<8x128xf32>
      %710 = vector.broadcast %8 : f32 to vector<8x128xf32>
      %711 = arith.addf %710, %649 : vector<8x128xf32>
      %712 = tpu.reciprocal %711 : vector<8x128xf32> -> vector<8x128xf32>
      %713 = arith.mulf %649, %712 : vector<8x128xf32>
      %714 = vector.broadcast %cst : f32 to vector<8x128xf32>
      %715 = arith.mulf %714, %713 : vector<8x128xf32>
      %716 = arith.mulf %715, %692 : vector<8x128xf32>
      %717 = arith.mulf %716, %699 : vector<8x128xf32>
      %718 = arith.subf %649, %717 : vector<8x128xf32>
      %719 = vector.broadcast %23 : f32 to vector<8x128xf32>
      %720 = arith.mulf %719, %709 : vector<8x128xf32>
      %721 = arith.addf %718, %720 : vector<8x128xf32>
      %722 = vector.broadcast %38 : f32 to vector<8x128xf32>
      %723 = arith.mulf %722, %656 : vector<8x128xf32>
      %724 = arith.addf %721, %723 : vector<8x128xf32>
      %725 = vector.broadcast %39 : f32 to vector<8x128xf32>
      %726 = arith.mulf %725, %663 : vector<8x128xf32>
      %727 = arith.addf %724, %726 : vector<8x128xf32>
      %728 = vector.broadcast %40 : f32 to vector<8x128xf32>
      %729 = arith.mulf %728, %673 : vector<8x128xf32>
      %730 = arith.addf %727, %729 : vector<8x128xf32>
      %731 = vector.broadcast %cst_1 : f32 to vector<8x128xf32>
      %732 = arith.subf %731, %649 : vector<8x128xf32>
      %733 = arith.mulf %697, %732 : vector<8x128xf32>
      %734 = arith.addf %730, %733 : vector<8x128xf32>
      %735 = arith.addf %656, %717 : vector<8x128xf32>
      %736 = arith.subf %735, %709 : vector<8x128xf32>
      %737 = arith.addf %38, %41 : f32
      %738 = vector.broadcast %737 : f32 to vector<8x128xf32>
      %739 = arith.addf %738, %697 : vector<8x128xf32>
      %740 = arith.mulf %739, %656 : vector<8x128xf32>
      %741 = arith.subf %736, %740 : vector<8x128xf32>
      %742 = vector.broadcast %26 : f32 to vector<8x128xf32>
      %743 = arith.mulf %742, %709 : vector<8x128xf32>
      %744 = arith.addf %663, %743 : vector<8x128xf32>
      %745 = vector.broadcast %39 : f32 to vector<8x128xf32>
      %746 = arith.addf %745, %697 : vector<8x128xf32>
      %747 = arith.mulf %746, %663 : vector<8x128xf32>
      %748 = arith.subf %744, %747 : vector<8x128xf32>
      %749 = vector.broadcast %41 : f32 to vector<8x128xf32>
      %750 = arith.mulf %749, %656 : vector<8x128xf32>
      %751 = arith.addf %673, %750 : vector<8x128xf32>
      %752 = vector.broadcast %45 : f32 to vector<8x128xf32>
      %753 = arith.mulf %752, %709 : vector<8x128xf32>
      %754 = arith.addf %751, %753 : vector<8x128xf32>
      %755 = vector.broadcast %43 : f32 to vector<8x128xf32>
      %756 = arith.addf %755, %697 : vector<8x128xf32>
      %757 = arith.mulf %756, %673 : vector<8x128xf32>
      %758 = arith.subf %754, %757 : vector<8x128xf32>
      %c9 = arith.constant 9 : index
      %759 = arith.index_cast %arg7 : i32 to index
      %c0_155 = arith.constant 0 : index
      %c0_156 = arith.constant 0 : index
      %760 = vector.load %arg4[%c9, %759, %c0_155, %c0_156] : memref<14x2x8x128xf32, #tpu.memory_space<vmem>>, vector<1x1x8x128xf32>
      %761 = vector.shape_cast %760 : vector<1x1x8x128xf32> to vector<8x128xf32>
      %c9_157 = arith.constant 9 : index
      %762 = arith.index_cast %arg7 : i32 to index
      %c0_158 = arith.constant 0 : index
      %c0_159 = arith.constant 0 : index
      %763 = vector.load %arg5[%c9_157, %762, %c0_158, %c0_159] : memref<14x2x8x128xf32, #tpu.memory_space<vmem>>, vector<1x1x8x128xf32>
      %764 = vector.shape_cast %763 : vector<1x1x8x128xf32> to vector<8x128xf32>
      %765 = vector.broadcast %cst : f32 to vector<8x128xf32>
      %766 = arith.mulf %765, %764 : vector<8x128xf32>
      %767 = vector.broadcast %cst_0 : f32 to vector<8x128xf32>
      %768 = arith.maximumf %767, %741 : vector<8x128xf32>
      %769 = vector.broadcast %cst_0 : f32 to vector<8x128xf32>
      %770 = arith.maximumf %769, %748 : vector<8x128xf32>
      %771 = vector.broadcast %37 : f32 to vector<8x128xf32>
      %772 = arith.mulf %771, %768 : vector<8x128xf32>
      %773 = math.exp %772 : vector<8x128xf32>
      %cst_160 = arith.constant 1.000000e+00 : f32
      %774 = vector.broadcast %cst_160 : f32 to vector<8x128xf32>
      %775 = arith.subf %774, %773 : vector<8x128xf32>
      %776 = vector.broadcast %36 : f32 to vector<8x128xf32>
      %777 = arith.mulf %776, %775 : vector<8x128xf32>
      %778 = arith.mulf %777, %770 : vector<8x128xf32>
      %779 = vector.broadcast %8 : f32 to vector<8x128xf32>
      %780 = arith.addf %779, %734 : vector<8x128xf32>
      %781 = tpu.reciprocal %780 : vector<8x128xf32> -> vector<8x128xf32>
      %782 = arith.mulf %734, %781 : vector<8x128xf32>
      %783 = vector.broadcast %cst : f32 to vector<8x128xf32>
      %784 = arith.mulf %783, %782 : vector<8x128xf32>
      %785 = arith.mulf %784, %761 : vector<8x128xf32>
      %786 = arith.mulf %785, %768 : vector<8x128xf32>
      %787 = arith.subf %734, %786 : vector<8x128xf32>
      %788 = vector.broadcast %23 : f32 to vector<8x128xf32>
      %789 = arith.mulf %788, %778 : vector<8x128xf32>
      %790 = arith.addf %787, %789 : vector<8x128xf32>
      %791 = vector.broadcast %38 : f32 to vector<8x128xf32>
      %792 = arith.mulf %791, %741 : vector<8x128xf32>
      %793 = arith.addf %790, %792 : vector<8x128xf32>
      %794 = vector.broadcast %39 : f32 to vector<8x128xf32>
      %795 = arith.mulf %794, %748 : vector<8x128xf32>
      %796 = arith.addf %793, %795 : vector<8x128xf32>
      %797 = vector.broadcast %40 : f32 to vector<8x128xf32>
      %798 = arith.mulf %797, %758 : vector<8x128xf32>
      %799 = arith.addf %796, %798 : vector<8x128xf32>
      %800 = vector.broadcast %cst_1 : f32 to vector<8x128xf32>
      %801 = arith.subf %800, %734 : vector<8x128xf32>
      %802 = arith.mulf %766, %801 : vector<8x128xf32>
      %803 = arith.addf %799, %802 : vector<8x128xf32>
      %804 = arith.addf %741, %786 : vector<8x128xf32>
      %805 = arith.subf %804, %778 : vector<8x128xf32>
      %806 = arith.addf %38, %41 : f32
      %807 = vector.broadcast %806 : f32 to vector<8x128xf32>
      %808 = arith.addf %807, %766 : vector<8x128xf32>
      %809 = arith.mulf %808, %741 : vector<8x128xf32>
      %810 = arith.subf %805, %809 : vector<8x128xf32>
      %811 = vector.broadcast %26 : f32 to vector<8x128xf32>
      %812 = arith.mulf %811, %778 : vector<8x128xf32>
      %813 = arith.addf %748, %812 : vector<8x128xf32>
      %814 = vector.broadcast %39 : f32 to vector<8x128xf32>
      %815 = arith.addf %814, %766 : vector<8x128xf32>
      %816 = arith.mulf %815, %748 : vector<8x128xf32>
      %817 = arith.subf %813, %816 : vector<8x128xf32>
      %818 = vector.broadcast %41 : f32 to vector<8x128xf32>
      %819 = arith.mulf %818, %741 : vector<8x128xf32>
      %820 = arith.addf %758, %819 : vector<8x128xf32>
      %821 = vector.broadcast %45 : f32 to vector<8x128xf32>
      %822 = arith.mulf %821, %778 : vector<8x128xf32>
      %823 = arith.addf %820, %822 : vector<8x128xf32>
      %824 = vector.broadcast %43 : f32 to vector<8x128xf32>
      %825 = arith.addf %824, %766 : vector<8x128xf32>
      %826 = arith.mulf %825, %758 : vector<8x128xf32>
      %827 = arith.subf %823, %826 : vector<8x128xf32>
      %c0_161 = arith.constant 0 : index
      %c5_162 = arith.constant 5 : index
      %828 = arith.index_cast %arg7 : i32 to index
      %c0_163 = arith.constant 0 : index
      %c0_164 = arith.constant 0 : index
      %829 = vector.load %arg6[%c0_161, %c5_162, %828, %c0_163, %c0_164] : memref<4x8x2x8x128xf32, #tpu.memory_space<vmem>>, vector<1x1x1x8x128xf32>
      %830 = vector.shape_cast %829 : vector<1x1x1x8x128xf32> to vector<8x128xf32>
      %831 = vector.shape_cast %803 : vector<8x128xf32> to vector<1x1x1x8x128xf32>
      tpu.vector_store %arg6[%c0_161, %c5_162, %828, %c0_163, %c0_164], %831 {strides = array<i32>} : memref<4x8x2x8x128xf32, #tpu.memory_space<vmem>>, vector<1x1x1x8x128xf32>,
      %c1_165 = arith.constant 1 : index
      %c5_166 = arith.constant 5 : index
      %832 = arith.index_cast %arg7 : i32 to index
      %c0_167 = arith.constant 0 : index
      %c0_168 = arith.constant 0 : index
      %833 = vector.load %arg6[%c1_165, %c5_166, %832, %c0_167, %c0_168] : memref<4x8x2x8x128xf32, #tpu.memory_space<vmem>>, vector<1x1x1x8x128xf32>
      %834 = vector.shape_cast %833 : vector<1x1x1x8x128xf32> to vector<8x128xf32>
      %835 = vector.shape_cast %810 : vector<8x128xf32> to vector<1x1x1x8x128xf32>
      tpu.vector_store %arg6[%c1_165, %c5_166, %832, %c0_167, %c0_168], %835 {strides = array<i32>} : memref<4x8x2x8x128xf32, #tpu.memory_space<vmem>>, vector<1x1x1x8x128xf32>,
      %c2_169 = arith.constant 2 : index
      %c5_170 = arith.constant 5 : index
      %836 = arith.index_cast %arg7 : i32 to index
      %c0_171 = arith.constant 0 : index
      %c0_172 = arith.constant 0 : index
      %837 = vector.load %arg6[%c2_169, %c5_170, %836, %c0_171, %c0_172] : memref<4x8x2x8x128xf32, #tpu.memory_space<vmem>>, vector<1x1x1x8x128xf32>
      %838 = vector.shape_cast %837 : vector<1x1x1x8x128xf32> to vector<8x128xf32>
      %839 = vector.shape_cast %817 : vector<8x128xf32> to vector<1x1x1x8x128xf32>
      tpu.vector_store %arg6[%c2_169, %c5_170, %836, %c0_171, %c0_172], %839 {strides = array<i32>} : memref<4x8x2x8x128xf32, #tpu.memory_space<vmem>>, vector<1x1x1x8x128xf32>,
      %c3_173 = arith.constant 3 : index
      %c5_174 = arith.constant 5 : index
      %840 = arith.index_cast %arg7 : i32 to index
      %c0_175 = arith.constant 0 : index
      %c0_176 = arith.constant 0 : index
      %841 = vector.load %arg6[%c3_173, %c5_174, %840, %c0_175, %c0_176] : memref<4x8x2x8x128xf32, #tpu.memory_space<vmem>>, vector<1x1x1x8x128xf32>
      %842 = vector.shape_cast %841 : vector<1x1x1x8x128xf32> to vector<8x128xf32>
      %843 = vector.shape_cast %827 : vector<8x128xf32> to vector<1x1x1x8x128xf32>
      tpu.vector_store %arg6[%c3_173, %c5_174, %840, %c0_175, %c0_176], %843 {strides = array<i32>} : memref<4x8x2x8x128xf32, #tpu.memory_space<vmem>>, vector<1x1x1x8x128xf32>,
      %c10 = arith.constant 10 : index
      %844 = arith.index_cast %arg7 : i32 to index
      %c0_177 = arith.constant 0 : index
      %c0_178 = arith.constant 0 : index
      %845 = vector.load %arg4[%c10, %844, %c0_177, %c0_178] : memref<14x2x8x128xf32, #tpu.memory_space<vmem>>, vector<1x1x8x128xf32>
      %846 = vector.shape_cast %845 : vector<1x1x8x128xf32> to vector<8x128xf32>
      %c10_179 = arith.constant 10 : index
      %847 = arith.index_cast %arg7 : i32 to index
      %c0_180 = arith.constant 0 : index
      %c0_181 = arith.constant 0 : index
      %848 = vector.load %arg5[%c10_179, %847, %c0_180, %c0_181] : memref<14x2x8x128xf32, #tpu.memory_space<vmem>>, vector<1x1x8x128xf32>
      %849 = vector.shape_cast %848 : vector<1x1x8x128xf32> to vector<8x128xf32>
      %850 = vector.broadcast %cst : f32 to vector<8x128xf32>
      %851 = arith.mulf %850, %849 : vector<8x128xf32>
      %852 = vector.broadcast %cst_0 : f32 to vector<8x128xf32>
      %853 = arith.maximumf %852, %810 : vector<8x128xf32>
      %854 = vector.broadcast %cst_0 : f32 to vector<8x128xf32>
      %855 = arith.maximumf %854, %817 : vector<8x128xf32>
      %856 = vector.broadcast %37 : f32 to vector<8x128xf32>
      %857 = arith.mulf %856, %853 : vector<8x128xf32>
      %858 = math.exp %857 : vector<8x128xf32>
      %cst_182 = arith.constant 1.000000e+00 : f32
      %859 = vector.broadcast %cst_182 : f32 to vector<8x128xf32>
      %860 = arith.subf %859, %858 : vector<8x128xf32>
      %861 = vector.broadcast %36 : f32 to vector<8x128xf32>
      %862 = arith.mulf %861, %860 : vector<8x128xf32>
      %863 = arith.mulf %862, %855 : vector<8x128xf32>
      %864 = vector.broadcast %8 : f32 to vector<8x128xf32>
      %865 = arith.addf %864, %803 : vector<8x128xf32>
      %866 = tpu.reciprocal %865 : vector<8x128xf32> -> vector<8x128xf32>
      %867 = arith.mulf %803, %866 : vector<8x128xf32>
      %868 = vector.broadcast %cst : f32 to vector<8x128xf32>
      %869 = arith.mulf %868, %867 : vector<8x128xf32>
      %870 = arith.mulf %869, %846 : vector<8x128xf32>
      %871 = arith.mulf %870, %853 : vector<8x128xf32>
      %872 = arith.subf %803, %871 : vector<8x128xf32>
      %873 = vector.broadcast %23 : f32 to vector<8x128xf32>
      %874 = arith.mulf %873, %863 : vector<8x128xf32>
      %875 = arith.addf %872, %874 : vector<8x128xf32>
      %876 = vector.broadcast %38 : f32 to vector<8x128xf32>
      %877 = arith.mulf %876, %810 : vector<8x128xf32>
      %878 = arith.addf %875, %877 : vector<8x128xf32>
      %879 = vector.broadcast %39 : f32 to vector<8x128xf32>
      %880 = arith.mulf %879, %817 : vector<8x128xf32>
      %881 = arith.addf %878, %880 : vector<8x128xf32>
      %882 = vector.broadcast %40 : f32 to vector<8x128xf32>
      %883 = arith.mulf %882, %827 : vector<8x128xf32>
      %884 = arith.addf %881, %883 : vector<8x128xf32>
      %885 = vector.broadcast %cst_1 : f32 to vector<8x128xf32>
      %886 = arith.subf %885, %803 : vector<8x128xf32>
      %887 = arith.mulf %851, %886 : vector<8x128xf32>
      %888 = arith.addf %884, %887 : vector<8x128xf32>
      %889 = arith.addf %810, %871 : vector<8x128xf32>
      %890 = arith.subf %889, %863 : vector<8x128xf32>
      %891 = arith.addf %38, %41 : f32
      %892 = vector.broadcast %891 : f32 to vector<8x128xf32>
      %893 = arith.addf %892, %851 : vector<8x128xf32>
      %894 = arith.mulf %893, %810 : vector<8x128xf32>
      %895 = arith.subf %890, %894 : vector<8x128xf32>
      %896 = vector.broadcast %26 : f32 to vector<8x128xf32>
      %897 = arith.mulf %896, %863 : vector<8x128xf32>
      %898 = arith.addf %817, %897 : vector<8x128xf32>
      %899 = vector.broadcast %39 : f32 to vector<8x128xf32>
      %900 = arith.addf %899, %851 : vector<8x128xf32>
      %901 = arith.mulf %900, %817 : vector<8x128xf32>
      %902 = arith.subf %898, %901 : vector<8x128xf32>
      %903 = vector.broadcast %41 : f32 to vector<8x128xf32>
      %904 = arith.mulf %903, %810 : vector<8x128xf32>
      %905 = arith.addf %827, %904 : vector<8x128xf32>
      %906 = vector.broadcast %45 : f32 to vector<8x128xf32>
      %907 = arith.mulf %906, %863 : vector<8x128xf32>
      %908 = arith.addf %905, %907 : vector<8x128xf32>
      %909 = vector.broadcast %43 : f32 to vector<8x128xf32>
      %910 = arith.addf %909, %851 : vector<8x128xf32>
      %911 = arith.mulf %910, %827 : vector<8x128xf32>
      %912 = arith.subf %908, %911 : vector<8x128xf32>
      %c11 = arith.constant 11 : index
      %913 = arith.index_cast %arg7 : i32 to index
      %c0_183 = arith.constant 0 : index
      %c0_184 = arith.constant 0 : index
      %914 = vector.load %arg4[%c11, %913, %c0_183, %c0_184] : memref<14x2x8x128xf32, #tpu.memory_space<vmem>>, vector<1x1x8x128xf32>
      %915 = vector.shape_cast %914 : vector<1x1x8x128xf32> to vector<8x128xf32>
      %c11_185 = arith.constant 11 : index
      %916 = arith.index_cast %arg7 : i32 to index
      %c0_186 = arith.constant 0 : index
      %c0_187 = arith.constant 0 : index
      %917 = vector.load %arg5[%c11_185, %916, %c0_186, %c0_187] : memref<14x2x8x128xf32, #tpu.memory_space<vmem>>, vector<1x1x8x128xf32>
      %918 = vector.shape_cast %917 : vector<1x1x8x128xf32> to vector<8x128xf32>
      %919 = vector.broadcast %cst : f32 to vector<8x128xf32>
      %920 = arith.mulf %919, %918 : vector<8x128xf32>
      %921 = vector.broadcast %cst_0 : f32 to vector<8x128xf32>
      %922 = arith.maximumf %921, %895 : vector<8x128xf32>
      %923 = vector.broadcast %cst_0 : f32 to vector<8x128xf32>
      %924 = arith.maximumf %923, %902 : vector<8x128xf32>
      %925 = vector.broadcast %37 : f32 to vector<8x128xf32>
      %926 = arith.mulf %925, %922 : vector<8x128xf32>
      %927 = math.exp %926 : vector<8x128xf32>
      %cst_188 = arith.constant 1.000000e+00 : f32
      %928 = vector.broadcast %cst_188 : f32 to vector<8x128xf32>
      %929 = arith.subf %928, %927 : vector<8x128xf32>
      %930 = vector.broadcast %36 : f32 to vector<8x128xf32>
      %931 = arith.mulf %930, %929 : vector<8x128xf32>
      %932 = arith.mulf %931, %924 : vector<8x128xf32>
      %933 = vector.broadcast %8 : f32 to vector<8x128xf32>
      %934 = arith.addf %933, %888 : vector<8x128xf32>
      %935 = tpu.reciprocal %934 : vector<8x128xf32> -> vector<8x128xf32>
      %936 = arith.mulf %888, %935 : vector<8x128xf32>
      %937 = vector.broadcast %cst : f32 to vector<8x128xf32>
      %938 = arith.mulf %937, %936 : vector<8x128xf32>
      %939 = arith.mulf %938, %915 : vector<8x128xf32>
      %940 = arith.mulf %939, %922 : vector<8x128xf32>
      %941 = arith.subf %888, %940 : vector<8x128xf32>
      %942 = vector.broadcast %23 : f32 to vector<8x128xf32>
      %943 = arith.mulf %942, %932 : vector<8x128xf32>
      %944 = arith.addf %941, %943 : vector<8x128xf32>
      %945 = vector.broadcast %38 : f32 to vector<8x128xf32>
      %946 = arith.mulf %945, %895 : vector<8x128xf32>
      %947 = arith.addf %944, %946 : vector<8x128xf32>
      %948 = vector.broadcast %39 : f32 to vector<8x128xf32>
      %949 = arith.mulf %948, %902 : vector<8x128xf32>
      %950 = arith.addf %947, %949 : vector<8x128xf32>
      %951 = vector.broadcast %40 : f32 to vector<8x128xf32>
      %952 = arith.mulf %951, %912 : vector<8x128xf32>
      %953 = arith.addf %950, %952 : vector<8x128xf32>
      %954 = vector.broadcast %cst_1 : f32 to vector<8x128xf32>
      %955 = arith.subf %954, %888 : vector<8x128xf32>
      %956 = arith.mulf %920, %955 : vector<8x128xf32>
      %957 = arith.addf %953, %956 : vector<8x128xf32>
      %958 = arith.addf %895, %940 : vector<8x128xf32>
      %959 = arith.subf %958, %932 : vector<8x128xf32>
      %960 = arith.addf %38, %41 : f32
      %961 = vector.broadcast %960 : f32 to vector<8x128xf32>
      %962 = arith.addf %961, %920 : vector<8x128xf32>
      %963 = arith.mulf %962, %895 : vector<8x128xf32>
      %964 = arith.subf %959, %963 : vector<8x128xf32>
      %965 = vector.broadcast %26 : f32 to vector<8x128xf32>
      %966 = arith.mulf %965, %932 : vector<8x128xf32>
      %967 = arith.addf %902, %966 : vector<8x128xf32>
      %968 = vector.broadcast %39 : f32 to vector<8x128xf32>
      %969 = arith.addf %968, %920 : vector<8x128xf32>
      %970 = arith.mulf %969, %902 : vector<8x128xf32>
      %971 = arith.subf %967, %970 : vector<8x128xf32>
      %972 = vector.broadcast %41 : f32 to vector<8x128xf32>
      %973 = arith.mulf %972, %895 : vector<8x128xf32>
      %974 = arith.addf %912, %973 : vector<8x128xf32>
      %975 = vector.broadcast %45 : f32 to vector<8x128xf32>
      %976 = arith.mulf %975, %932 : vector<8x128xf32>
      %977 = arith.addf %974, %976 : vector<8x128xf32>
      %978 = vector.broadcast %43 : f32 to vector<8x128xf32>
      %979 = arith.addf %978, %920 : vector<8x128xf32>
      %980 = arith.mulf %979, %912 : vector<8x128xf32>
      %981 = arith.subf %977, %980 : vector<8x128xf32>
      %c0_189 = arith.constant 0 : index
      %c6_190 = arith.constant 6 : index
      %982 = arith.index_cast %arg7 : i32 to index
      %c0_191 = arith.constant 0 : index
      %c0_192 = arith.constant 0 : index
      %983 = vector.load %arg6[%c0_189, %c6_190, %982, %c0_191, %c0_192] : memref<4x8x2x8x128xf32, #tpu.memory_space<vmem>>, vector<1x1x1x8x128xf32>
      %984 = vector.shape_cast %983 : vector<1x1x1x8x128xf32> to vector<8x128xf32>
      %985 = vector.shape_cast %957 : vector<8x128xf32> to vector<1x1x1x8x128xf32>
      tpu.vector_store %arg6[%c0_189, %c6_190, %982, %c0_191, %c0_192], %985 {strides = array<i32>} : memref<4x8x2x8x128xf32, #tpu.memory_space<vmem>>, vector<1x1x1x8x128xf32>,
      %c1_193 = arith.constant 1 : index
      %c6_194 = arith.constant 6 : index
      %986 = arith.index_cast %arg7 : i32 to index
      %c0_195 = arith.constant 0 : index
      %c0_196 = arith.constant 0 : index
      %987 = vector.load %arg6[%c1_193, %c6_194, %986, %c0_195, %c0_196] : memref<4x8x2x8x128xf32, #tpu.memory_space<vmem>>, vector<1x1x1x8x128xf32>
      %988 = vector.shape_cast %987 : vector<1x1x1x8x128xf32> to vector<8x128xf32>
      %989 = vector.shape_cast %964 : vector<8x128xf32> to vector<1x1x1x8x128xf32>
      tpu.vector_store %arg6[%c1_193, %c6_194, %986, %c0_195, %c0_196], %989 {strides = array<i32>} : memref<4x8x2x8x128xf32, #tpu.memory_space<vmem>>, vector<1x1x1x8x128xf32>,
      %c2_197 = arith.constant 2 : index
      %c6_198 = arith.constant 6 : index
      %990 = arith.index_cast %arg7 : i32 to index
      %c0_199 = arith.constant 0 : index
      %c0_200 = arith.constant 0 : index
      %991 = vector.load %arg6[%c2_197, %c6_198, %990, %c0_199, %c0_200] : memref<4x8x2x8x128xf32, #tpu.memory_space<vmem>>, vector<1x1x1x8x128xf32>
      %992 = vector.shape_cast %991 : vector<1x1x1x8x128xf32> to vector<8x128xf32>
      %993 = vector.shape_cast %971 : vector<8x128xf32> to vector<1x1x1x8x128xf32>
      tpu.vector_store %arg6[%c2_197, %c6_198, %990, %c0_199, %c0_200], %993 {strides = array<i32>} : memref<4x8x2x8x128xf32, #tpu.memory_space<vmem>>, vector<1x1x1x8x128xf32>,
      %c3_201 = arith.constant 3 : index
      %c6_202 = arith.constant 6 : index
      %994 = arith.index_cast %arg7 : i32 to index
      %c0_203 = arith.constant 0 : index
      %c0_204 = arith.constant 0 : index
      %995 = vector.load %arg6[%c3_201, %c6_202, %994, %c0_203, %c0_204] : memref<4x8x2x8x128xf32, #tpu.memory_space<vmem>>, vector<1x1x1x8x128xf32>
      %996 = vector.shape_cast %995 : vector<1x1x1x8x128xf32> to vector<8x128xf32>
      %997 = vector.shape_cast %981 : vector<8x128xf32> to vector<1x1x1x8x128xf32>
      tpu.vector_store %arg6[%c3_201, %c6_202, %994, %c0_203, %c0_204], %997 {strides = array<i32>} : memref<4x8x2x8x128xf32, #tpu.memory_space<vmem>>, vector<1x1x1x8x128xf32>,
      %c12 = arith.constant 12 : index
      %998 = arith.index_cast %arg7 : i32 to index
      %c0_205 = arith.constant 0 : index
      %c0_206 = arith.constant 0 : index
      %999 = vector.load %arg4[%c12, %998, %c0_205, %c0_206] : memref<14x2x8x128xf32, #tpu.memory_space<vmem>>, vector<1x1x8x128xf32>
      %1000 = vector.shape_cast %999 : vector<1x1x8x128xf32> to vector<8x128xf32>
      %c12_207 = arith.constant 12 : index
      %1001 = arith.index_cast %arg7 : i32 to index
      %c0_208 = arith.constant 0 : index
      %c0_209 = arith.constant 0 : index
      %1002 = vector.load %arg5[%c12_207, %1001, %c0_208, %c0_209] : memref<14x2x8x128xf32, #tpu.memory_space<vmem>>, vector<1x1x8x128xf32>
      %1003 = vector.shape_cast %1002 : vector<1x1x8x128xf32> to vector<8x128xf32>
      %1004 = vector.broadcast %cst : f32 to vector<8x128xf32>
      %1005 = arith.mulf %1004, %1003 : vector<8x128xf32>
      %1006 = vector.broadcast %cst_0 : f32 to vector<8x128xf32>
      %1007 = arith.maximumf %1006, %964 : vector<8x128xf32>
      %1008 = vector.broadcast %cst_0 : f32 to vector<8x128xf32>
      %1009 = arith.maximumf %1008, %971 : vector<8x128xf32>
      %1010 = vector.broadcast %37 : f32 to vector<8x128xf32>
      %1011 = arith.mulf %1010, %1007 : vector<8x128xf32>
      %1012 = math.exp %1011 : vector<8x128xf32>
      %cst_210 = arith.constant 1.000000e+00 : f32
      %1013 = vector.broadcast %cst_210 : f32 to vector<8x128xf32>
      %1014 = arith.subf %1013, %1012 : vector<8x128xf32>
      %1015 = vector.broadcast %36 : f32 to vector<8x128xf32>
      %1016 = arith.mulf %1015, %1014 : vector<8x128xf32>
      %1017 = arith.mulf %1016, %1009 : vector<8x128xf32>
      %1018 = vector.broadcast %8 : f32 to vector<8x128xf32>
      %1019 = arith.addf %1018, %957 : vector<8x128xf32>
      %1020 = tpu.reciprocal %1019 : vector<8x128xf32> -> vector<8x128xf32>
      %1021 = arith.mulf %957, %1020 : vector<8x128xf32>
      %1022 = vector.broadcast %cst : f32 to vector<8x128xf32>
      %1023 = arith.mulf %1022, %1021 : vector<8x128xf32>
      %1024 = arith.mulf %1023, %1000 : vector<8x128xf32>
      %1025 = arith.mulf %1024, %1007 : vector<8x128xf32>
      %1026 = arith.subf %957, %1025 : vector<8x128xf32>
      %1027 = vector.broadcast %23 : f32 to vector<8x128xf32>
      %1028 = arith.mulf %1027, %1017 : vector<8x128xf32>
      %1029 = arith.addf %1026, %1028 : vector<8x128xf32>
      %1030 = vector.broadcast %38 : f32 to vector<8x128xf32>
      %1031 = arith.mulf %1030, %964 : vector<8x128xf32>
      %1032 = arith.addf %1029, %1031 : vector<8x128xf32>
      %1033 = vector.broadcast %39 : f32 to vector<8x128xf32>
      %1034 = arith.mulf %1033, %971 : vector<8x128xf32>
      %1035 = arith.addf %1032, %1034 : vector<8x128xf32>
      %1036 = vector.broadcast %40 : f32 to vector<8x128xf32>
      %1037 = arith.mulf %1036, %981 : vector<8x128xf32>
      %1038 = arith.addf %1035, %1037 : vector<8x128xf32>
      %1039 = vector.broadcast %cst_1 : f32 to vector<8x128xf32>
      %1040 = arith.subf %1039, %957 : vector<8x128xf32>
      %1041 = arith.mulf %1005, %1040 : vector<8x128xf32>
      %1042 = arith.addf %1038, %1041 : vector<8x128xf32>
      %1043 = arith.addf %964, %1025 : vector<8x128xf32>
      %1044 = arith.subf %1043, %1017 : vector<8x128xf32>
      %1045 = arith.addf %38, %41 : f32
      %1046 = vector.broadcast %1045 : f32 to vector<8x128xf32>
      %1047 = arith.addf %1046, %1005 : vector<8x128xf32>
      %1048 = arith.mulf %1047, %964 : vector<8x128xf32>
      %1049 = arith.subf %1044, %1048 : vector<8x128xf32>
      %1050 = vector.broadcast %26 : f32 to vector<8x128xf32>
      %1051 = arith.mulf %1050, %1017 : vector<8x128xf32>
      %1052 = arith.addf %971, %1051 : vector<8x128xf32>
      %1053 = vector.broadcast %39 : f32 to vector<8x128xf32>
      %1054 = arith.addf %1053, %1005 : vector<8x128xf32>
      %1055 = arith.mulf %1054, %971 : vector<8x128xf32>
      %1056 = arith.subf %1052, %1055 : vector<8x128xf32>
      %1057 = vector.broadcast %41 : f32 to vector<8x128xf32>
      %1058 = arith.mulf %1057, %964 : vector<8x128xf32>
      %1059 = arith.addf %981, %1058 : vector<8x128xf32>
      %1060 = vector.broadcast %45 : f32 to vector<8x128xf32>
      %1061 = arith.mulf %1060, %1017 : vector<8x128xf32>
      %1062 = arith.addf %1059, %1061 : vector<8x128xf32>
      %1063 = vector.broadcast %43 : f32 to vector<8x128xf32>
      %1064 = arith.addf %1063, %1005 : vector<8x128xf32>
      %1065 = arith.mulf %1064, %981 : vector<8x128xf32>
      %1066 = arith.subf %1062, %1065 : vector<8x128xf32>
      %c13 = arith.constant 13 : index
      %1067 = arith.index_cast %arg7 : i32 to index
      %c0_211 = arith.constant 0 : index
      %c0_212 = arith.constant 0 : index
      %1068 = vector.load %arg4[%c13, %1067, %c0_211, %c0_212] : memref<14x2x8x128xf32, #tpu.memory_space<vmem>>, vector<1x1x8x128xf32>
      %1069 = vector.shape_cast %1068 : vector<1x1x8x128xf32> to vector<8x128xf32>
      %c13_213 = arith.constant 13 : index
      %1070 = arith.index_cast %arg7 : i32 to index
      %c0_214 = arith.constant 0 : index
      %c0_215 = arith.constant 0 : index
      %1071 = vector.load %arg5[%c13_213, %1070, %c0_214, %c0_215] : memref<14x2x8x128xf32, #tpu.memory_space<vmem>>, vector<1x1x8x128xf32>
      %1072 = vector.shape_cast %1071 : vector<1x1x8x128xf32> to vector<8x128xf32>
      %1073 = vector.broadcast %cst : f32 to vector<8x128xf32>
      %1074 = arith.mulf %1073, %1072 : vector<8x128xf32>
      %1075 = vector.broadcast %cst_0 : f32 to vector<8x128xf32>
      %1076 = arith.maximumf %1075, %1049 : vector<8x128xf32>
      %1077 = vector.broadcast %cst_0 : f32 to vector<8x128xf32>
      %1078 = arith.maximumf %1077, %1056 : vector<8x128xf32>
      %1079 = vector.broadcast %37 : f32 to vector<8x128xf32>
      %1080 = arith.mulf %1079, %1076 : vector<8x128xf32>
      %1081 = math.exp %1080 : vector<8x128xf32>
      %cst_216 = arith.constant 1.000000e+00 : f32
      %1082 = vector.broadcast %cst_216 : f32 to vector<8x128xf32>
      %1083 = arith.subf %1082, %1081 : vector<8x128xf32>
      %1084 = vector.broadcast %36 : f32 to vector<8x128xf32>
      %1085 = arith.mulf %1084, %1083 : vector<8x128xf32>
      %1086 = arith.mulf %1085, %1078 : vector<8x128xf32>
      %1087 = vector.broadcast %8 : f32 to vector<8x128xf32>
      %1088 = arith.addf %1087, %1042 : vector<8x128xf32>
      %1089 = tpu.reciprocal %1088 : vector<8x128xf32> -> vector<8x128xf32>
      %1090 = arith.mulf %1042, %1089 : vector<8x128xf32>
      %1091 = vector.broadcast %cst : f32 to vector<8x128xf32>
      %1092 = arith.mulf %1091, %1090 : vector<8x128xf32>
      %1093 = arith.mulf %1092, %1069 : vector<8x128xf32>
      %1094 = arith.mulf %1093, %1076 : vector<8x128xf32>
      %1095 = arith.subf %1042, %1094 : vector<8x128xf32>
      %1096 = vector.broadcast %23 : f32 to vector<8x128xf32>
      %1097 = arith.mulf %1096, %1086 : vector<8x128xf32>
      %1098 = arith.addf %1095, %1097 : vector<8x128xf32>
      %1099 = vector.broadcast %38 : f32 to vector<8x128xf32>
      %1100 = arith.mulf %1099, %1049 : vector<8x128xf32>
      %1101 = arith.addf %1098, %1100 : vector<8x128xf32>
      %1102 = vector.broadcast %39 : f32 to vector<8x128xf32>
      %1103 = arith.mulf %1102, %1056 : vector<8x128xf32>
      %1104 = arith.addf %1101, %1103 : vector<8x128xf32>
      %1105 = vector.broadcast %40 : f32 to vector<8x128xf32>
      %1106 = arith.mulf %1105, %1066 : vector<8x128xf32>
      %1107 = arith.addf %1104, %1106 : vector<8x128xf32>
      %1108 = vector.broadcast %cst_1 : f32 to vector<8x128xf32>
      %1109 = arith.subf %1108, %1042 : vector<8x128xf32>
      %1110 = arith.mulf %1074, %1109 : vector<8x128xf32>
      %1111 = arith.addf %1107, %1110 : vector<8x128xf32>
      %1112 = arith.addf %1049, %1094 : vector<8x128xf32>
      %1113 = arith.subf %1112, %1086 : vector<8x128xf32>
      %1114 = arith.addf %38, %41 : f32
      %1115 = vector.broadcast %1114 : f32 to vector<8x128xf32>
      %1116 = arith.addf %1115, %1074 : vector<8x128xf32>
      %1117 = arith.mulf %1116, %1049 : vector<8x128xf32>
      %1118 = arith.subf %1113, %1117 : vector<8x128xf32>
      %1119 = vector.broadcast %26 : f32 to vector<8x128xf32>
      %1120 = arith.mulf %1119, %1086 : vector<8x128xf32>
      %1121 = arith.addf %1056, %1120 : vector<8x128xf32>
      %1122 = vector.broadcast %39 : f32 to vector<8x128xf32>
      %1123 = arith.addf %1122, %1074 : vector<8x128xf32>
      %1124 = arith.mulf %1123, %1056 : vector<8x128xf32>
      %1125 = arith.subf %1121, %1124 : vector<8x128xf32>
      %1126 = vector.broadcast %41 : f32 to vector<8x128xf32>
      %1127 = arith.mulf %1126, %1049 : vector<8x128xf32>
      %1128 = arith.addf %1066, %1127 : vector<8x128xf32>
      %1129 = vector.broadcast %45 : f32 to vector<8x128xf32>
      %1130 = arith.mulf %1129, %1086 : vector<8x128xf32>
      %1131 = arith.addf %1128, %1130 : vector<8x128xf32>
      %1132 = vector.broadcast %43 : f32 to vector<8x128xf32>
      %1133 = arith.addf %1132, %1074 : vector<8x128xf32>
      %1134 = arith.mulf %1133, %1066 : vector<8x128xf32>
      %1135 = arith.subf %1131, %1134 : vector<8x128xf32>
      %c0_217 = arith.constant 0 : index
      %c7_218 = arith.constant 7 : index
      %1136 = arith.index_cast %arg7 : i32 to index
      %c0_219 = arith.constant 0 : index
      %c0_220 = arith.constant 0 : index
      %1137 = vector.load %arg6[%c0_217, %c7_218, %1136, %c0_219, %c0_220] : memref<4x8x2x8x128xf32, #tpu.memory_space<vmem>>, vector<1x1x1x8x128xf32>
      %1138 = vector.shape_cast %1137 : vector<1x1x1x8x128xf32> to vector<8x128xf32>
      %1139 = vector.shape_cast %1111 : vector<8x128xf32> to vector<1x1x1x8x128xf32>
      tpu.vector_store %arg6[%c0_217, %c7_218, %1136, %c0_219, %c0_220], %1139 {strides = array<i32>} : memref<4x8x2x8x128xf32, #tpu.memory_space<vmem>>, vector<1x1x1x8x128xf32>,
      %c1_221 = arith.constant 1 : index
      %c7_222 = arith.constant 7 : index
      %1140 = arith.index_cast %arg7 : i32 to index
      %c0_223 = arith.constant 0 : index
      %c0_224 = arith.constant 0 : index
      %1141 = vector.load %arg6[%c1_221, %c7_222, %1140, %c0_223, %c0_224] : memref<4x8x2x8x128xf32, #tpu.memory_space<vmem>>, vector<1x1x1x8x128xf32>
      %1142 = vector.shape_cast %1141 : vector<1x1x1x8x128xf32> to vector<8x128xf32>
      %1143 = vector.shape_cast %1118 : vector<8x128xf32> to vector<1x1x1x8x128xf32>
      tpu.vector_store %arg6[%c1_221, %c7_222, %1140, %c0_223, %c0_224], %1143 {strides = array<i32>} : memref<4x8x2x8x128xf32, #tpu.memory_space<vmem>>, vector<1x1x1x8x128xf32>,
      %c2_225 = arith.constant 2 : index
      %c7_226 = arith.constant 7 : index
      %1144 = arith.index_cast %arg7 : i32 to index
      %c0_227 = arith.constant 0 : index
      %c0_228 = arith.constant 0 : index
      %1145 = vector.load %arg6[%c2_225, %c7_226, %1144, %c0_227, %c0_228] : memref<4x8x2x8x128xf32, #tpu.memory_space<vmem>>, vector<1x1x1x8x128xf32>
      %1146 = vector.shape_cast %1145 : vector<1x1x1x8x128xf32> to vector<8x128xf32>
      %1147 = vector.shape_cast %1125 : vector<8x128xf32> to vector<1x1x1x8x128xf32>
      tpu.vector_store %arg6[%c2_225, %c7_226, %1144, %c0_227, %c0_228], %1147 {strides = array<i32>} : memref<4x8x2x8x128xf32, #tpu.memory_space<vmem>>, vector<1x1x1x8x128xf32>,
      %c3_229 = arith.constant 3 : index
      %c7_230 = arith.constant 7 : index
      %1148 = arith.index_cast %arg7 : i32 to index
      %c0_231 = arith.constant 0 : index
      %c0_232 = arith.constant 0 : index
      %1149 = vector.load %arg6[%c3_229, %c7_230, %1148, %c0_231, %c0_232] : memref<4x8x2x8x128xf32, #tpu.memory_space<vmem>>, vector<1x1x1x8x128xf32>
      %1150 = vector.shape_cast %1149 : vector<1x1x1x8x128xf32> to vector<8x128xf32>
      %1151 = vector.shape_cast %1135 : vector<8x128xf32> to vector<1x1x1x8x128xf32>
      tpu.vector_store %arg6[%c3_229, %c7_230, %1148, %c0_231, %c0_232], %1151 {strides = array<i32>} : memref<4x8x2x8x128xf32, #tpu.memory_space<vmem>>, vector<1x1x1x8x128xf32>,
    }
    %c2_i32_2 = arith.constant 2 : i32
    return
  }
  func.func @transform_0(%arg0: i32, %arg1: memref<2xi32, #tpu.memory_space<smem>>, %arg2: memref<20xf32, #tpu.memory_space<smem>>) -> (i32, i32, i32, i32) {
    %c0_i32 = arith.constant 0 : i32
    %c0_i32_0 = arith.constant 0 : i32
    %c0_i32_1 = arith.constant 0 : i32
    %c0_i32_2 = arith.constant 0 : i32
    return %c0_i32, %arg0, %c0_i32_0, %c0_i32_1 : i32, i32, i32, i32
  }
  func.func @transform_1(%arg0: i32, %arg1: memref<2xi32, #tpu.memory_space<smem>>, %arg2: memref<20xf32, #tpu.memory_space<smem>>) -> (i32, i32, i32, i32) {
    %c0_i32 = arith.constant 0 : i32
    %c0_i32_0 = arith.constant 0 : i32
    %c0_i32_1 = arith.constant 0 : i32
    %c0_i32_2 = arith.constant 0 : i32
    return %c0_i32, %arg0, %c0_i32_0, %c0_i32_1 : i32, i32, i32, i32
  }
  func.func @transform_2(%arg0: i32, %arg1: memref<2xi32, #tpu.memory_space<smem>>, %arg2: memref<20xf32, #tpu.memory_space<smem>>) -> (i32, i32, i32, i32) {
    %c0_i32 = arith.constant 0 : i32
    %c0_i32_0 = arith.constant 0 : i32
    %c0_i32_1 = arith.constant 0 : i32
    %c0_i32_2 = arith.constant 0 : i32
    return %c0_i32, %arg0, %c0_i32_0, %c0_i32_1 : i32, i32, i32, i32
  }
  func.func @transform_3(%arg0: i32, %arg1: memref<2xi32, #tpu.memory_space<smem>>, %arg2: memref<20xf32, #tpu.memory_space<smem>>) -> (i32, i32, i32, i32, i32) {
    %c0_i32 = arith.constant 0 : i32
    %c0_i32_0 = arith.constant 0 : i32
    %c0_i32_1 = arith.constant 0 : i32
    %c0_i32_2 = arith.constant 0 : i32
    %c0_i32_3 = arith.constant 0 : i32
    return %c0_i32, %c0_i32_0, %arg0, %c0_i32_1, %c0_i32_2 : i32, i32, i32, i32, i32
  }
}

</mosaic_0001>

<bundles_post_ra>
// kernel: _forward_impl.1
= control target key start
LH: loop header
LB: loop body
LE: loop exit
PB: predicated region body
PF: predicated region fallthrough
CT: control target
= control target key end

     0   :  { %s1707_s0 = inlined_call_operand.vmem [shape: s32[2], index: 0, kind: input, shape index: {}]   ;;  %s1708_s2 = inlined_call_operand.vmem [shape: f32[4,2,8,128], index: 2, kind: input, shape index: {}]   ;;  %s1709_s3 = inlined_call_operand.vmem [shape: f32[14,2,8,128], index: 3, kind: input, shape index: {}]   ;;  %s1710_s4 = inlined_call_operand.vmem [shape: f32[14,2,8,128], index: 4, kind: input, shape index: {}]   ;;  %s1711_s5 = inlined_call_operand.vmem [shape: f32[4,8,2,8,128], index: 5, kind: output, shape index: {}]   ;;  %s1712_s1 = inlined_call_operand.vmem [shape: f32[20], index: 1, kind: input, shape index: {}]  }
   0x1   :  { %s10_s20 = sshll.u32 %s1707_s0, 4  ;;  %s14_s23 = sshll.u32 %s1712_s1, 4  ;;  %s11_s20 = int_to_ptr.vmem [resolvable:$true] %s10_s20  ;;  %s15_s23 = int_to_ptr.vmem [resolvable:$true] %s14_s23 }
   0x2   :  { %s1243_s24 = scalar_lea.vmem %s11_s20, 16  ;;  %p1248_p1 = scmp.lt.s32.totalorder %s11_s20, %s11_s20 }
   0x3   :  { %p1244_p0 = scmp.ne.s32.totalorder %s11_s20, %s1243_s24  ;;  %p1249_p2 = scmp.lt.s32.totalorder %s1243_s24, %s1243_s24 }
   0x5   :  { %p1250_p3 = por %p1249_p2, %p1248_p1 }
   0x7   :  { %p1251_p4 = pnand %p1250_p3, %p1244_p0 }
   0x9   :  { %1254 = shalt.err (!%p1251_p4)  }
   0xa   :  { %s1277_s25 = smov [#allocation3]   ;;  %s1255_s26 = scalar_lea.vmem %s15_s23, 16 }
   0xb   :  { %13 = dma.vmem_to_smem %s11_s20, 16, %s1277_s25, [#allocation2] }
   0xc   :  { %p1256_p5 = scmp.ne.s32.totalorder %s15_s23, %s1255_s26  ;;  %p1260_p6 = scmp.lt.s32.totalorder %s15_s23, %s15_s23 }
   0xd   :  { %p1261_p7 = scmp.lt.s32.totalorder %s1255_s26, %s1255_s26 }
   0xf   :  { %p1262_p8 = por %p1261_p7, %p1260_p6 }
  0x11   :  { %p1263_p9 = pnand %p1262_p8, %p1256_p5 }
  0x13   :  { %1266 = shalt.err (!%p1263_p9)  }
  0x14   :  { %s1278_s0 = smov [#allocation4]  }
  0x15   :  { %17 = dma.vmem_to_smem %s15_s23, 16, %s1278_s0, [#allocation2] }
  0x16   :  { %1271 = dma.done.wait [#allocation2], 32 }
  0x17   :  { %1272 = vsyncadd [#allocation2], 4294967264 }
  0x18   :  { %19 = sfence }
  0x19   :  { %s1315_s1 = smov 0  }
  0x1a LB: > { %s34_s27 = sld [smem:[#allocation3 + %s1275_s1]]  ;;  %s1322_s28 = sshll.u32 %s1275_s1, 3  ;;  %s1275_s1 = sphi %s1315_s1, %s31_s1  }
  0x1b   : > { %s66_s6 = scalar_lea.vmem %s1708_s2, %s1322_s28  ;;  %s1332_s9 = scalar_lea.vmem %s1711_s5, %s1322_s28 }
  0x1c   : > { %v1334_v0 = vld [vmem:[%s66_s6] sm:$0xff]  ;;  %v1336_v1 = vld [vmem:[%s66_s6 + $0x10] sm:$0xff]  ;;  %s1376_s26 = scalar_lea.vmem %s1710_s4, %s1322_s28  ;;  %s1386_s7 = scalar_lea.vmem %s1709_s3, %s1322_s28 }
  0x1d   : > { %v1338_v2 = vld [vmem:[%s66_s6 + $0x20] sm:$0xff]  ;;  %78 = vst [vmem:[%s1332_s9] sm:$0xff] %v1334_v0  ;;  %1064 = vst [vmem:[%s1332_s9 + $0x80] sm:$0xff] %v1336_v1  ;;  %v1346_v3 = vld [vmem:[%s66_s6 + $0x30] sm:$0xff]  ;;  %v93_v5 = vmax.f32 %v1336_v1, 0.01  ;;  %v123_v36 = vsub.f32 8.0, %v1334_v0 }
  0x1e   : > { %1066 = vst [vmem:[%s1332_s9 + $0x100] sm:$0xff] %v1338_v2  ;;  %1068 = vst [vmem:[%s1332_s9 + $0x180] sm:$0xff] %v1346_v3  ;;  %v91_v10 = vld [vmem:[%s1376_s26] sm:$0xff]  ;;  %v94_v21 = vmax.f32 %v1338_v2, 0.01  ;;  %v1072_v63 = vld [vmem:[%s1376_s26 + $0x10] sm:$0xff] }
  0x1f   : > { %v89_v13 = vld [vmem:[%s1386_s7] sm:$0xff]  ;;  %v92_v14 = vmul.f32 0.5, %v91_v10  ;;  %s31_s1 = sadd.s32 1, %s1275_s1  }
  0x20   : > { %s1350_s10 = smul.u32 10, %s34_s27  ;;  %p28_p10 = scmp.ge.s32.totalorder %s31_s1, 2  }
  0x21   : > { %v124_v44 = vmul.f32 %v123_v36, %v92_v14 }
  0x22   : > { %s36_s11 = sld [smem:[#allocation4 + %s1350_s10]]  ;;  %s41_s12 = sadd.s32 3, %s1350_s10 }
  0x23   : > { %s42_s13 = sld [smem:[#allocation4 + %s41_s12]]  ;;  %s43_s14 = sadd.s32 4, %s1350_s10 }
  0x24   : > { %s49_s15 = sadd.s32 7, %s1350_s10  ;;  %s1361_s17 = sld [smem:[#allocation4 + %s43_s14]] }
  0x25   : > { %s1363_s18 = sld [smem:[#allocation4 + %s49_s15]]  ;;  %s37_s19 = sadd.s32 1, %s1350_s10 }
  0x26   : > { %s38_s20 = sld [smem:[#allocation4 + %s37_s19]]  ;;  %s39_s23 = sadd.s32 2, %s1350_s10 }
  0x27   : > { %s45_s0 = sadd.s32 5, %s1350_s10  ;;  %s1379_s27 = sld [smem:[#allocation4 + %s39_s23]] }
  0x28   : > { %v1355_v4 = vstv %s36_s11  ;;  %s51_s29 = sadd.s32 8, %s1350_s10  ;;  %s1393_s11 = sld [smem:[#allocation4 + %s45_s0]] }
  0x29   : > { %v104_v6 = vadd.f32 %v1355_v4, %v1334_v0  ;;  %s56_s16 = ssub.f32 0.0, %s42_s13  ;;  %s53_s14 = sadd.s32 9, %s1350_s10 }
  0x2a   : > { %s57_s21 = smul.f32 0.5, %s1361_s17  ;;  %s1396_s13 = sld [smem:[#allocation4 + %s51_s29]] }
  0x2b   : > { %1187 = vrcp.f32 %v104_v6  ;;  %v1365_v7 = vstv %s56_s16  ;;  %s60_s22 = smul.f32 0.5, %s1363_s18  ;;  %s47_s16 = sadd.s32 6, %s1350_s10  ;;  %v153_v6 = vmul.f32 0.5, %v1072_v63 }
  0x2c   : > { %v96_v8 = vmul.f32 %v1365_v7, %v93_v5  ;;  %s55_s12 = smul.f32 0.5, %s38_s20  ;;  %v1414_v26 = vstv %s57_s21  ;;  %s54_s19 = sld [smem:[#allocation4 + %s53_s14]] }
  0x2d   : > { %s128_s8 = sadd.f32 %s60_s22, %s57_s21  ;;  %s58_s28 = smul.f32 0.5, %s1379_s27  ;;  %v115_v33 = vmul.f32 %v1336_v1, %v1414_v26  ;;  %v1444_v50 = vstv %s60_s22 }
  0x2e   : > { %v97_v9 = vmul.f32 1.442695, %v96_v8  ;;  %v1401_v19 = vstv %s55_s12  ;;  %v1410_v25 = vstv %s1393_s11  ;;  %s48_s17 = sld [smem:[#allocation4 + %s47_s16]]  ;;  %v140_v54 = vmul.f32 %v1336_v1, %v1444_v50 }
  0x2f   : > { %v1399_v16 = vstv %s128_s8  ;;  %v1420_v31 = vstv %s58_s28  ;;  %s63_s10 = ssub.f32 1.0, %s1393_s11 }
  0x30   : > { %1189 = vpow2.f32 %v97_v9  ;;  %v130_v20 = vadd.f32 %v1399_v16, %v92_v14  ;;  %s59_s15 = smul.f32 0.5, %s1396_s13  ;;  %v118_v37 = vmul.f32 %v1338_v2, %v1420_v31  ;;  %v136_v52 = vadd.f32 %v1420_v31, %v92_v14 }
  0x31   : > { %v141_v59 = vadd.f32 %v1346_v3, %v140_v54 }
  0x32   : > { %v131_v28 = vmul.f32 %v1336_v1, %v130_v20  ;;  %v1425_v35 = vstv %s59_s15  ;;  %s61_s20 = sadd.f32 %s54_s19, %s1396_s13  ;;  %v137_v58 = vmul.f32 %v1338_v2, %v136_v52 }
  0x33   : > { %v121_v41 = vmul.f32 %v1346_v3, %v1425_v35 }
  0x34   : > { %v1438_v48 = vstv %s48_s17  ;;  %s62_s21 = smul.f32 0.5, %s61_s20  ;;  %s64_s23 = ssub.f32 %s63_s10, %s48_s17 }
  0x36   : > { %v1452_v55 = vstv %s64_s23  ;;  %v1454_v56 = vstv %s62_s21 }
  0x37   : > { %v146_v61 = vadd.f32 %v1454_v56, %v92_v14 }
  0x38   : > { %v1188_v11 = vpop.eup %1187 }
  0x39   : > { %v106_v12 = vmul.f32 %v1188_v11, %v1334_v0 }
  0x3b   : > { %v107_v15 = vmul.f32 0.5, %v106_v12 }
  0x3d   : > { %v1190_v17 = vpop.eup %1189  ;;  %v108_v18 = vmul.f32 %v107_v15, %v89_v13  ;;  %v194_v13 = vadd.f32 %v153_v6, %v1454_v56 }
  0x3e   : > { %v99_v22 = vsub.f32 1.0, %v1190_v17 }
  0x3f   : > { %v109_v23 = vmul.f32 %v108_v18, %v93_v5 }
  0x40   : > { %v101_v24 = vmul.f32 %v1401_v19, %v99_v22 }
  0x41   : > { %v126_v27 = vadd.f32 %v1336_v1, %v109_v23  ;;  %v110_v30 = vsub.f32 %v1334_v0, %v109_v23  ;;  %v147_v1 = vmul.f32 %v1346_v3, %v146_v61  ;;  %v1070_v3 = vld [vmem:[%s1386_s7 + $0x10] sm:$0xff] }
  0x42   : > { %v102_v29 = vmul.f32 %v101_v24, %v94_v21 }
  0x44   : > { %v112_v32 = vmul.f32 %v1410_v25, %v102_v29  ;;  %v127_v34 = vsub.f32 %v126_v27, %v102_v29  ;;  %v134_v51 = vmul.f32 %v1438_v48, %v102_v29  ;;  %v143_v60 = vmul.f32 %v1452_v55, %v102_v29 }
  0x46   : > { %v113_v38 = vadd.f32 %v112_v32, %v110_v30  ;;  %v1430_v39 = vsub.f32 %v127_v34, %v131_v28  ;;  %v135_v57 = vadd.f32 %v1338_v2, %v134_v51  ;;  %v144_v0 = vadd.f32 %v143_v60, %v141_v59 }
  0x47   : > { %v187_v2 = vadd.f32 %v153_v6, %v1420_v31  ;;  %v182_v28 = vadd.f32 %v153_v6, %v1399_v16 }
  0x48   : > { %v116_v40 = vadd.f32 %v115_v33, %v113_v38  ;;  %v154_v42 = vmax.f32 %v1430_v39, 0.01  ;;  %v138_v62 = vsub.f32 %v135_v57, %v137_v58  ;;  %v190_v10 = vmul.f32 %v1444_v50, %v1430_v39 }
  0x49   : > { %v148_v11 = vsub.f32 %v144_v0, %v147_v1  ;;  %v171_v38 = vmul.f32 %v1430_v39, %v1414_v26 }
  0x4a   : > { %v119_v43 = vadd.f32 %v118_v37, %v116_v40  ;;  %v156_v45 = vmul.f32 %v154_v42, %v1365_v7  ;;  %v155_v8 = vmax.f32 %v138_v62, 0.01  ;;  %v188_v20 = vmul.f32 %v187_v2, %v138_v62 }
  0x4b   : > { %v191_v18 = vadd.f32 %v190_v10, %v148_v11  ;;  %v195_v24 = vmul.f32 %v194_v13, %v148_v11  ;;  %v1082_v10 = vld [vmem:[%s1386_s7 + $0x20] sm:$0xff] }
  0x4c   : > { %v122_v46 = vadd.f32 %v121_v41, %v119_v43  ;;  %v157_v47 = vmul.f32 1.442695, %v156_v45  ;;  %v183_v41 = vmul.f32 %v182_v28, %v1430_v39  ;;  %v173_v43 = vmul.f32 %v138_v62, %v1420_v31 }
  0x4e   : > { %v1440_v49 = vadd.f32 %v124_v44, %v122_v46  ;;  %1191 = vpow2.f32 %v157_v47  ;;  %v175_v46 = vmul.f32 %v148_v11, %v1425_v35 }
  0x50   : > { %v162_v53 = vadd.f32 %v1440_v49, %v1355_v4  ;;  %v177_v44 = vsub.f32 8.0, %v1440_v49 }
  0x52   : > { %1193 = vrcp.f32 %v162_v53  ;;  %v178_v53 = vmul.f32 %v177_v44, %v153_v6 }
  0x5b   : > { %v1192_v5 = vpop.eup %1191 }
  0x5c   : > { %v159_v9 = vsub.f32 1.0, %v1192_v5 }
  0x5e   : > { %v160_v12 = vmul.f32 %v159_v9, %v1401_v19 }
  0x5f   : > { %v1194_v14 = vpop.eup %1193 }
  0x60   : > { %v164_v15 = vmul.f32 %v1194_v14, %v1440_v49  ;;  %v161_v17 = vmul.f32 %v160_v12, %v155_v8 }
  0x62   : > { %v165_v21 = vmul.f32 0.5, %v164_v15  ;;  %v185_v22 = vmul.f32 %v161_v17, %v1438_v48  ;;  %v192_v23 = vmul.f32 %v161_v17, %v1452_v55  ;;  %v169_v33 = vmul.f32 %v161_v17, %v1410_v25 }
  0x64   : > { %v166_v27 = vmul.f32 %v1070_v3, %v165_v21  ;;  %v186_v29 = vadd.f32 %v185_v22, %v138_v62  ;;  %v193_v30 = vadd.f32 %v192_v23, %v191_v18 }
  0x66   : > { %v167_v32 = vmul.f32 %v166_v27, %v154_v42  ;;  %v1474_v34 = vsub.f32 %v186_v29, %v188_v20  ;;  %v196_v36 = vsub.f32 %v193_v30, %v195_v24 }
  0x68   : > { %v168_v37 = vsub.f32 %v1440_v49, %v167_v32  ;;  %v180_v40 = vadd.f32 %v167_v32, %v1430_v39  ;;  %1078 = vst [vmem:[%s1332_s9 + $0x110] sm:$0xff] %v1474_v34  ;;  %1080 = vst [vmem:[%s1332_s9 + $0x190] sm:$0xff] %v196_v36  ;;  %v1084_v49 = vld [vmem:[%s1376_s26 + $0x20] sm:$0xff]  ;;  %v214_v63 = vmax.f32 %v1474_v34, 0.01  ;;  %v232_v29 = vmul.f32 %v1474_v34, %v1420_v31 }
  0x69   : > { %v212_v62 = vmul.f32 0.5, %v1084_v49 }
  0x6a   : > { %v170_v42 = vadd.f32 %v169_v33, %v168_v37  ;;  %v181_v45 = vsub.f32 %v180_v40, %v161_v17  ;;  %v234_v37 = vmul.f32 %v196_v36, %v1425_v35 }
  0x6b   : > { %v253_v9 = vadd.f32 %v212_v62, %v1454_v56  ;;  %v241_v17 = vadd.f32 %v212_v62, %v1399_v16 }
  0x6c   : > { %v172_v47 = vadd.f32 %v171_v38, %v170_v42  ;;  %v184_v51 = vsub.f32 %v181_v45, %v183_v41 }
  0x6d   : > { %v254_v15 = vmul.f32 %v253_v9, %v196_v36 }
  0x6e   : > { %v174_v52 = vadd.f32 %v173_v43, %v172_v47  ;;  %1076 = vst [vmem:[%s1332_s9 + $0x90] sm:$0xff] %v184_v51  ;;  %v213_v54 = vmax.f32 %v184_v51, 0.01  ;;  %v249_v1 = vmul.f32 %v184_v51, %v1444_v50  ;;  %v230_v21 = vmul.f32 %v184_v51, %v1414_v26 }
  0x6f   : > { %v242_v27 = vmul.f32 %v241_v17, %v184_v51 }
  0x70   : > { %v176_v39 = vadd.f32 %v175_v46, %v174_v52  ;;  %v215_v57 = vmul.f32 %v213_v54, %v1365_v7  ;;  %v250_v12 = vadd.f32 %v249_v1, %v196_v36  ;;  %v246_v36 = vadd.f32 %v212_v62, %v1420_v31 }
  0x72   : > { %v179_v58 = vadd.f32 %v178_v53, %v176_v39  ;;  %v216_v59 = vmul.f32 1.442695, %v215_v57  ;;  %v247_v39 = vmul.f32 %v246_v36, %v1474_v34 }
  0x74   : > { %1074 = vst [vmem:[%s1332_s9 + $0x10] sm:$0xff] %v179_v58  ;;  %v221_v60 = vadd.f32 %v179_v58, %v1355_v4  ;;  %1195 = vpow2.f32 %v216_v59  ;;  %v236_v30 = vsub.f32 8.0, %v179_v58 }
  0x76   : > { %1197 = vrcp.f32 %v221_v60  ;;  %v237_v41 = vmul.f32 %v236_v30, %v212_v62  ;;  %v1086_v62 = vld [vmem:[%s1386_s7 + $0x30] sm:$0xff] }
  0x81   : > { %v1196_v61 = vpop.eup %1195 }
  0x82   : > { %v218_v0 = vsub.f32 1.0, %v1196_v61 }
  0x83   : > { %v1198_v5 = vpop.eup %1197 }
  0x84   : > { %v223_v6 = vmul.f32 %v1198_v5, %v179_v58  ;;  %v219_v8 = vmul.f32 %v218_v0, %v1401_v19 }
  0x86   : > { %v224_v2 = vmul.f32 0.5, %v223_v6  ;;  %v220_v11 = vmul.f32 %v219_v8, %v214_v63 }
  0x88   : > { %v225_v13 = vmul.f32 %v1082_v10, %v224_v2  ;;  %v251_v14 = vmul.f32 %v220_v11, %v1452_v55  ;;  %v228_v3 = vmul.f32 %v220_v11, %v1410_v25  ;;  %v244_v53 = vmul.f32 %v220_v11, %v1438_v48 }
  0x8a   : > { %v226_v18 = vmul.f32 %v225_v13, %v213_v54  ;;  %v252_v20 = vadd.f32 %v251_v14, %v250_v12  ;;  %v245_v54 = vadd.f32 %v244_v53, %v1474_v34 }
  0x8c   : > { %v227_v22 = vsub.f32 %v179_v58, %v226_v18  ;;  %v239_v23 = vadd.f32 %v226_v18, %v184_v51  ;;  %v255_v24 = vsub.f32 %v252_v20, %v254_v15  ;;  %v248_v57 = vsub.f32 %v245_v54, %v247_v39  ;;  %v1088_v58 = vld [vmem:[%s1376_s26 + $0x30] sm:$0xff] }
  0x8d   : > { %v260_v60 = vmul.f32 0.5, %v1088_v58 }
  0x8e   : > { %v229_v28 = vadd.f32 %v228_v3, %v227_v22  ;;  %v240_v32 = vsub.f32 %v239_v23, %v220_v11  ;;  %v262_v49 = vmax.f32 %v248_v57, 0.01 }
  0x8f   : > { %v294_v0 = vadd.f32 %v260_v60, %v1420_v31  ;;  %v301_v6 = vadd.f32 %v260_v60, %v1454_v56  ;;  %v289_v10 = vadd.f32 %v260_v60, %v1399_v16 }
  0x90   : > { %v231_v33 = vadd.f32 %v230_v21, %v229_v28  ;;  %v243_v38 = vsub.f32 %v240_v32, %v242_v27 }
  0x91   : > { %v295_v34 = vmul.f32 %v294_v0, %v248_v57  ;;  %v302_v13 = vmul.f32 %v301_v6, %v255_v24 }
  0x92   : > { %v233_v40 = vadd.f32 %v232_v29, %v231_v33  ;;  %v261_v42 = vmax.f32 %v243_v38, 0.01  ;;  %v297_v43 = vmul.f32 %v243_v38, %v1444_v50  ;;  %v278_v3 = vmul.f32 %v243_v38, %v1414_v26 }
  0x93   : > { %v290_v20 = vmul.f32 %v289_v10, %v243_v38  ;;  %v280_v29 = vmul.f32 %v248_v57, %v1420_v31 }
  0x94   : > { %v235_v44 = vadd.f32 %v234_v37, %v233_v40  ;;  %v263_v45 = vmul.f32 %v261_v42, %v1365_v7  ;;  %v298_v46 = vadd.f32 %v297_v43, %v255_v24  ;;  %v282_v37 = vmul.f32 %v255_v24, %v1425_v35  ;;  %v1100_v24 = vld [vmem:[%s1376_s26 + $0x40] sm:$0xff] }
  0x95   : > { %v320_v36 = vmul.f32 0.5, %v1100_v24 }
  0x96   : > { %v238_v47 = vadd.f32 %v237_v41, %v235_v44  ;;  %v264_v51 = vmul.f32 1.442695, %v263_v45 }
  0x97   : > { %v349_v6 = vadd.f32 %v320_v36, %v1399_v16 }
  0x98   : > { %v269_v52 = vadd.f32 %v238_v47, %v1355_v4  ;;  %1199 = vpow2.f32 %v264_v51  ;;  %v284_v30 = vsub.f32 8.0, %v238_v47 }
  0x9a   : > { %1201 = vrcp.f32 %v269_v52 }
  0xa5   : > { %v1200_v59 = vpop.eup %1199 }
  0xa6   : > { %v266_v61 = vsub.f32 1.0, %v1200_v59 }
  0xa7   : > { %v1202_v63 = vpop.eup %1201 }
  0xa8   : > { %v271_v1 = vmul.f32 %v1202_v63, %v238_v47  ;;  %v267_v5 = vmul.f32 %v266_v61, %v1401_v19 }
  0xaa   : > { %v268_v8 = vmul.f32 %v267_v5, %v262_v49  ;;  %v272_v9 = vmul.f32 0.5, %v271_v1  ;;  %v1098_v49 = vld [vmem:[%s1386_s7 + $0x40] sm:$0xff] }
  0xac   : > { %v273_v2 = vmul.f32 %v1086_v62, %v272_v9  ;;  %v292_v11 = vmul.f32 %v268_v8, %v1438_v48  ;;  %v299_v12 = vmul.f32 %v268_v8, %v1452_v55  ;;  %v276_v15 = vmul.f32 %v268_v8, %v1410_v25 }
  0xae   : > { %v274_v14 = vmul.f32 %v273_v2, %v261_v42  ;;  %v293_v17 = vadd.f32 %v292_v11, %v248_v57  ;;  %v300_v18 = vadd.f32 %v299_v12, %v298_v46  ;;  %v285_v42 = vmul.f32 %v284_v30, %v260_v60 }
  0xaf   : > { %v361_v60 = vadd.f32 %v320_v36, %v1454_v56 }
  0xb0   : > { %v275_v21 = vsub.f32 %v238_v47, %v274_v14  ;;  %v287_v22 = vadd.f32 %v274_v14, %v243_v38  ;;  %v1521_v23 = vsub.f32 %v293_v17, %v295_v34  ;;  %v303_v27 = vsub.f32 %v300_v18, %v302_v13 }
  0xb2   : > { %v277_v28 = vadd.f32 %v276_v15, %v275_v21  ;;  %v288_v32 = vsub.f32 %v287_v22, %v268_v8  ;;  %1094 = vst [vmem:[%s1332_s9 + $0x120] sm:$0xff] %v1521_v23  ;;  %1096 = vst [vmem:[%s1332_s9 + $0x1a0] sm:$0xff] %v303_v27  ;;  %v322_v54 = vmax.f32 %v1521_v23, 0.01  ;;  %v362_v5 = vmul.f32 %v361_v60, %v303_v27 }
  0xb3   : > { %v340_v14 = vmul.f32 %v1521_v23, %v1420_v31 }
  0xb4   : > { %v279_v33 = vadd.f32 %v278_v3, %v277_v28  ;;  %v291_v40 = vsub.f32 %v288_v32, %v290_v20  ;;  %v342_v3 = vmul.f32 %v303_v27, %v1425_v35 }
  0xb6   : > { %v281_v41 = vadd.f32 %v280_v29, %v279_v33  ;;  %1092 = vst [vmem:[%s1332_s9 + $0xa0] sm:$0xff] %v291_v40  ;;  %v321_v38 = vmax.f32 %v291_v40, 0.01  ;;  %v357_v43 = vmul.f32 %v291_v40, %v1444_v50  ;;  %v338_v10 = vmul.f32 %v291_v40, %v1414_v26 }
  0xb7   : > { %v350_v12 = vmul.f32 %v349_v6, %v291_v40 }
  0xb8   : > { %v283_v44 = vadd.f32 %v282_v37, %v281_v41  ;;  %v323_v45 = vmul.f32 %v321_v38, %v1365_v7  ;;  %v358_v46 = vadd.f32 %v357_v43, %v303_v27  ;;  %v354_v27 = vadd.f32 %v320_v36, %v1420_v31 }
  0xba   : > { %v286_v47 = vadd.f32 %v285_v42, %v283_v44  ;;  %v324_v51 = vmul.f32 1.442695, %v323_v45  ;;  %v355_v43 = vmul.f32 %v354_v27, %v1521_v23  ;;  %v1104_v45 = vld [vmem:[%s1376_s26 + $0x50] sm:$0xff] }
  0xbc   : > { %1090 = vst [vmem:[%s1332_s9 + $0x20] sm:$0xff] %v286_v47  ;;  %v329_v52 = vadd.f32 %v286_v47, %v1355_v4  ;;  %1203 = vpow2.f32 %v324_v51  ;;  %v344_v15 = vsub.f32 8.0, %v286_v47 }
  0xbe   : > { %1205 = vrcp.f32 %v329_v52  ;;  %v345_v22 = vmul.f32 %v344_v15, %v320_v36  ;;  %v1102_v36 = vld [vmem:[%s1386_s7 + $0x50] sm:$0xff] }
  0xc9   : > { %v1204_v53 = vpop.eup %1203 }
  0xca   : > { %v326_v39 = vsub.f32 1.0, %v1204_v53 }
  0xcb   : > { %v1206_v57 = vpop.eup %1205 }
  0xcc   : > { %v331_v58 = vmul.f32 %v1206_v57, %v286_v47  ;;  %v327_v59 = vmul.f32 %v326_v39, %v1401_v19 }
  0xce   : > { %v332_v61 = vmul.f32 0.5, %v331_v58  ;;  %v328_v63 = vmul.f32 %v327_v59, %v322_v54 }
  0xd0   : > { %v333_v0 = vmul.f32 %v1098_v49, %v332_v61  ;;  %v359_v1 = vmul.f32 %v328_v63, %v1452_v55  ;;  %v336_v8 = vmul.f32 %v328_v63, %v1410_v25  ;;  %v352_v42 = vmul.f32 %v328_v63, %v1438_v48 }
  0xd2   : > { %v334_v62 = vmul.f32 %v333_v0, %v321_v38  ;;  %v360_v9 = vadd.f32 %v359_v1, %v358_v46  ;;  %v353_v38 = vadd.f32 %v352_v42, %v1521_v23 }
  0xd4   : > { %v335_v34 = vsub.f32 %v286_v47, %v334_v62  ;;  %v347_v2 = vadd.f32 %v334_v62, %v291_v40  ;;  %v363_v11 = vsub.f32 %v360_v9, %v362_v5  ;;  %v356_v44 = vsub.f32 %v353_v38, %v355_v43 }
  0xd5   : > { %v369_v47 = vmul.f32 0.5, %v1104_v45 }
  0xd6   : > { %v337_v13 = vadd.f32 %v336_v8, %v335_v34  ;;  %v348_v17 = vsub.f32 %v347_v2, %v328_v63  ;;  %v371_v51 = vmax.f32 %v356_v44, 0.01 }
  0xd7   : > { %v403_v53 = vadd.f32 %v369_v47, %v1420_v31  ;;  %v410_v57 = vadd.f32 %v369_v47, %v1454_v56  ;;  %v398_v60 = vadd.f32 %v369_v47, %v1399_v16 }
  0xd8   : > { %v339_v18 = vadd.f32 %v338_v10, %v337_v13  ;;  %v351_v20 = vsub.f32 %v348_v17, %v350_v12 }
  0xd9   : > { %v404_v23 = vmul.f32 %v403_v53, %v356_v44  ;;  %v411_v0 = vmul.f32 %v410_v57, %v363_v11 }
  0xda   : > { %v341_v21 = vadd.f32 %v340_v14, %v339_v18  ;;  %v370_v28 = vmax.f32 %v351_v20, 0.01  ;;  %v406_v29 = vmul.f32 %v351_v20, %v1444_v50  ;;  %v387_v8 = vmul.f32 %v351_v20, %v1414_v26 }
  0xdb   : > { %v399_v9 = vmul.f32 %v398_v60, %v351_v20  ;;  %v389_v14 = vmul.f32 %v356_v44, %v1420_v31 }
  0xdc   : > { %v343_v30 = vadd.f32 %v342_v3, %v341_v21  ;;  %v372_v32 = vmul.f32 %v370_v28, %v1365_v7  ;;  %v407_v33 = vadd.f32 %v406_v29, %v363_v11  ;;  %v391_v3 = vmul.f32 %v363_v11, %v1425_v35  ;;  %v1116_v11 = vld [vmem:[%s1376_s26 + $0x60] sm:$0xff] }
  0xdd   : > { %v429_v27 = vmul.f32 0.5, %v1116_v11 }
  0xde   : > { %v346_v37 = vadd.f32 %v345_v22, %v343_v30  ;;  %v373_v40 = vmul.f32 1.442695, %v372_v32 }
  0xdf   : > { %v463_v45 = vadd.f32 %v429_v27, %v1420_v31 }
  0xe0   : > { %v378_v41 = vadd.f32 %v346_v37, %v1355_v4  ;;  %1207 = vpow2.f32 %v373_v40  ;;  %v393_v15 = vsub.f32 8.0, %v346_v37 }
  0xe2   : > { %1209 = vrcp.f32 %v378_v41 }
  0xed   : > { %v1208_v46 = vpop.eup %1207 }
  0xee   : > { %v375_v52 = vsub.f32 1.0, %v1208_v46 }
  0xef   : > { %v1210_v24 = vpop.eup %1209 }
  0xf0   : > { %v380_v54 = vmul.f32 %v1210_v24, %v346_v37  ;;  %v376_v39 = vmul.f32 %v375_v52, %v1401_v19  ;;  %v1114_v52 = vld [vmem:[%s1386_s7 + $0x60] sm:$0xff] }
  0xf2   : > { %v377_v58 = vmul.f32 %v376_v39, %v371_v51  ;;  %v381_v59 = vmul.f32 0.5, %v380_v54  ;;  %v470_v51 = vadd.f32 %v429_v27, %v1454_v56  ;;  %v458_v39 = vadd.f32 %v429_v27, %v1399_v16 }
  0xf4   : > { %v382_v49 = vmul.f32 %v1102_v36, %v381_v59  ;;  %v401_v61 = vmul.f32 %v377_v58, %v1438_v48  ;;  %v408_v63 = vmul.f32 %v377_v58, %v1452_v55  ;;  %v385_v5 = vmul.f32 %v377_v58, %v1410_v25 }
  0xf6   : > { %v383_v1 = vmul.f32 %v382_v49, %v370_v28  ;;  %v402_v6 = vadd.f32 %v401_v61, %v356_v44  ;;  %v409_v62 = vadd.f32 %v408_v63, %v407_v33  ;;  %v394_v28 = vmul.f32 %v393_v15, %v369_v47 }
  0xf8   : > { %v384_v10 = vsub.f32 %v346_v37, %v383_v1  ;;  %v396_v34 = vadd.f32 %v383_v1, %v351_v20  ;;  %v405_v2 = vsub.f32 %v402_v6, %v404_v23  ;;  %v412_v12 = vsub.f32 %v409_v62, %v411_v0 }
  0xfa   : > { %v386_v13 = vadd.f32 %v385_v5, %v384_v10  ;;  %v397_v17 = vsub.f32 %v396_v34, %v377_v58  ;;  %1110 = vst [vmem:[%s1332_s9 + $0x130] sm:$0xff] %v405_v2  ;;  %1112 = vst [vmem:[%s1332_s9 + $0x1b0] sm:$0xff] %v412_v12  ;;  %v431_v38 = vmax.f32 %v405_v2, 0.01  ;;  %v464_v54 = vmul.f32 %v463_v45, %v405_v2 }
  0xfb   : > { %v471_v59 = vmul.f32 %v470_v51, %v412_v12 }
  0xfc   : > { %v388_v18 = vadd.f32 %v387_v8, %v386_v13  ;;  %v400_v21 = vsub.f32 %v397_v17, %v399_v9  ;;  %v449_v9 = vmul.f32 %v405_v2, %v1420_v31 }
  0xfe   : > { %v390_v22 = vadd.f32 %v389_v14, %v388_v18  ;;  %1108 = vst [vmem:[%s1332_s9 + $0xb0] sm:$0xff] %v400_v21  ;;  %v430_v29 = vmax.f32 %v400_v21, 0.01  ;;  %v466_v20 = vmul.f32 %v400_v21, %v1444_v50  ;;  %v447_v63 = vmul.f32 %v400_v21, %v1414_v26 }
  0xff   : > { %v459_v0 = vmul.f32 %v458_v39, %v400_v21  ;;  %v451_v14 = vmul.f32 %v412_v12, %v1425_v35 }
 0x100   : > { %v392_v30 = vadd.f32 %v391_v3, %v390_v22  ;;  %v432_v32 = vmul.f32 %v430_v29, %v1365_v7  ;;  %v467_v33 = vadd.f32 %v466_v20, %v412_v12 }
 0x102   : > { %v395_v37 = vadd.f32 %v394_v28, %v392_v30  ;;  %v433_v40 = vmul.f32 1.442695, %v432_v32  ;;  %v1120_v32 = vld [vmem:[%s1376_s26 + $0x70] sm:$0xff] }
 0x103   : > { %v478_v12 = vmul.f32 0.5, %v1120_v32 }
 0x104   : > { %1106 = vst [vmem:[%s1332_s9 + $0x30] sm:$0xff] %v395_v37  ;;  %v438_v41 = vadd.f32 %v395_v37, %v1355_v4  ;;  %1211 = vpow2.f32 %v433_v40  ;;  %v453_v10 = vsub.f32 8.0, %v395_v37 }
 0x105   : > { %v512_v11 = vadd.f32 %v478_v12, %v1420_v31 }
 0x106   : > { %1213 = vrcp.f32 %v438_v41  ;;  %v454_v18 = vmul.f32 %v453_v10, %v429_v27 }
 0x111   : > { %v1212_v42 = vpop.eup %1211 }
 0x112   : > { %v435_v43 = vsub.f32 1.0, %v1212_v42 }
 0x113   : > { %v1214_v44 = vpop.eup %1213 }
 0x114   : > { %v440_v46 = vmul.f32 %v1214_v44, %v395_v37  ;;  %v436_v47 = vmul.f32 %v435_v43, %v1401_v19  ;;  %v1118_v43 = vld [vmem:[%s1386_s7 + $0x70] sm:$0xff] }
 0x116   : > { %v441_v24 = vmul.f32 0.5, %v440_v46  ;;  %v437_v53 = vmul.f32 %v436_v47, %v431_v38  ;;  %v519_v38 = vadd.f32 %v478_v12, %v1454_v56  ;;  %v507_v46 = vadd.f32 %v478_v12, %v1399_v16 }
 0x118   : > { %v442_v57 = vmul.f32 %v1114_v52, %v441_v24  ;;  %v461_v36 = vmul.f32 %v437_v53, %v1438_v48  ;;  %v468_v58 = vmul.f32 %v437_v53, %v1452_v55  ;;  %v445_v49 = vmul.f32 %v437_v53, %v1410_v25 }
 0x11a   : > { %v462_v60 = vadd.f32 %v461_v36, %v405_v2  ;;  %v443_v23 = vmul.f32 %v442_v57, %v430_v29  ;;  %v469_v61 = vadd.f32 %v468_v58, %v467_v33 }
 0x11c   : > { %v444_v1 = vsub.f32 %v395_v37, %v443_v23  ;;  %v456_v5 = vadd.f32 %v443_v23, %v400_v21  ;;  %v472_v6 = vsub.f32 %v469_v61, %v471_v59  ;;  %v465_v62 = vsub.f32 %v462_v60, %v464_v54 }
 0x11e   : > { %v446_v8 = vadd.f32 %v445_v49, %v444_v1  ;;  %v457_v34 = vsub.f32 %v456_v5, %v437_v53  ;;  %v480_v37 = vmax.f32 %v465_v62, 0.01  ;;  %v513_v47 = vmul.f32 %v512_v11, %v465_v62 }
 0x11f   : > { %v520_v53 = vmul.f32 %v519_v38, %v472_v6 }
 0x120   : > { %v448_v13 = vadd.f32 %v447_v63, %v446_v8  ;;  %v460_v15 = vsub.f32 %v457_v34, %v459_v0  ;;  %v498_v0 = vmul.f32 %v465_v62, %v1420_v31 }
 0x122   : > { %v450_v17 = vadd.f32 %v449_v9, %v448_v13  ;;  %v479_v3 = vmax.f32 %v460_v15, 0.01  ;;  %v515_v22 = vmul.f32 %v460_v15, %v1444_v50  ;;  %v496_v58 = vmul.f32 %v460_v15, %v1414_v26 }
 0x123   : > { %v508_v59 = vmul.f32 %v507_v46, %v460_v15  ;;  %v500_v9 = vmul.f32 %v472_v6, %v1425_v35 }
 0x124   : > { %v452_v28 = vadd.f32 %v451_v14, %v450_v17  ;;  %v481_v21 = vmul.f32 %v479_v3, %v1365_v7  ;;  %v516_v29 = vadd.f32 %v515_v22, %v472_v6  ;;  %v1132_v6 = vld [vmem:[%s1376_s26 + $0x80] sm:$0xff] }
 0x126   : > { %v455_v20 = vadd.f32 %v454_v18, %v452_v28  ;;  %v482_v30 = vmul.f32 1.442695, %v481_v21 }
 0x128   : > { %v487_v2 = vadd.f32 %v455_v20, %v1355_v4  ;;  %1215 = vpow2.f32 %v482_v30  ;;  %v502_v1 = vsub.f32 8.0, %v455_v20 }
 0x12a   : > { %1217 = vrcp.f32 %v487_v2  ;;  %v503_v13 = vmul.f32 %v502_v1, %v478_v12 }
 0x135   : > { %v1216_v33 = vpop.eup %1215 }
 0x136   : > { %v484_v40 = vsub.f32 1.0, %v1216_v33 }
 0x137   : > { %v1218_v41 = vpop.eup %1217 }
 0x138   : > { %v489_v42 = vmul.f32 %v1218_v41, %v455_v20  ;;  %v485_v27 = vmul.f32 %v484_v40, %v1401_v19  ;;  %v1130_v40 = vld [vmem:[%s1386_s7 + $0x80] sm:$0xff] }
 0x13a   : > { %v486_v44 = vmul.f32 %v485_v27, %v480_v37  ;;  %v490_v45 = vmul.f32 0.5, %v489_v42 }
 0x13c   : > { %v491_v51 = vmul.f32 %v1118_v43, %v490_v45  ;;  %v510_v52 = vmul.f32 %v486_v44, %v1438_v48  ;;  %v517_v24 = vmul.f32 %v486_v44, %v1452_v55  ;;  %v494_v39 = vmul.f32 %v486_v44, %v1410_v25 }
 0x13e   : > { %v492_v54 = vmul.f32 %v491_v51, %v479_v3  ;;  %v511_v57 = vadd.f32 %v510_v52, %v465_v62  ;;  %v518_v36 = vadd.f32 %v517_v24, %v516_v29  ;;  %v537_v29 = vmul.f32 0.5, %v1132_v6 }
 0x140   : > { %v493_v60 = vsub.f32 %v455_v20, %v492_v54  ;;  %v505_v23 = vadd.f32 %v492_v54, %v460_v15  ;;  %v514_v49 = vsub.f32 %v511_v57, %v513_v47  ;;  %v521_v61 = vsub.f32 %v518_v36, %v520_v53 }
 0x141   : > { %v571_v32 = vadd.f32 %v537_v29, %v1420_v31  ;;  %v578_v37 = vadd.f32 %v537_v29, %v1454_v56  ;;  %v566_v27 = vadd.f32 %v537_v29, %v1399_v16 }
 0x142   : > { %v495_v63 = vadd.f32 %v494_v39, %v493_v60  ;;  %v506_v5 = vsub.f32 %v505_v23, %v486_v44  ;;  %1126 = vst [vmem:[%s1332_s9 + $0x140] sm:$0xff] %v514_v49  ;;  %1128 = vst [vmem:[%s1332_s9 + $0x1c0] sm:$0xff] %v521_v61  ;;  %v539_v20 = vmax.f32 %v514_v49, 0.01 }
 0x143   : > { %v572_v42 = vmul.f32 %v571_v32, %v514_v49  ;;  %v579_v45 = vmul.f32 %v578_v37, %v521_v61 }
 0x144   : > { %v497_v8 = vadd.f32 %v496_v58, %v495_v63  ;;  %v509_v10 = vsub.f32 %v506_v5, %v508_v59  ;;  %v557_v59 = vmul.f32 %v514_v49, %v1420_v31 }
 0x146   : > { %v499_v34 = vadd.f32 %v498_v0, %v497_v8  ;;  %1124 = vst [vmem:[%s1332_s9 + $0xc0] sm:$0xff] %v509_v10  ;;  %v538_v14 = vmax.f32 %v509_v10, 0.01  ;;  %v574_v15 = vmul.f32 %v509_v10, %v1444_v50  ;;  %v555_v24 = vmul.f32 %v509_v10, %v1414_v26 }
 0x147   : > { %v567_v53 = vmul.f32 %v566_v27, %v509_v10  ;;  %v559_v0 = vmul.f32 %v521_v61, %v1425_v35 }
 0x148   : > { %v501_v17 = vadd.f32 %v500_v9, %v499_v34  ;;  %v540_v18 = vmul.f32 %v538_v14, %v1365_v7  ;;  %v575_v62 = vadd.f32 %v574_v15, %v521_v61 }
 0x14a   : > { %v504_v3 = vadd.f32 %v503_v13, %v501_v17  ;;  %v541_v22 = vmul.f32 1.442695, %v540_v18  ;;  %v1136_v18 = vld [vmem:[%s1376_s26 + $0x90] sm:$0xff] }
 0x14b   : > { %v586_v61 = vmul.f32 0.5, %v1136_v18 }
 0x14c   : > { %1122 = vst [vmem:[%s1332_s9 + $0x40] sm:$0xff] %v504_v3  ;;  %v546_v28 = vadd.f32 %v504_v3, %v1355_v4  ;;  %1219 = vpow2.f32 %v541_v22  ;;  %v561_v60 = vsub.f32 8.0, %v504_v3 }
 0x14d   : > { %v620_v6 = vadd.f32 %v586_v61, %v1420_v31 }
 0x14e   : > { %1221 = vrcp.f32 %v546_v28  ;;  %v562_v8 = vmul.f32 %v561_v60, %v537_v29 }
 0x159   : > { %v1220_v21 = vpop.eup %1219 }
 0x15a   : > { %v543_v30 = vsub.f32 1.0, %v1220_v21 }
 0x15b   : > { %v1222_v2 = vpop.eup %1221 }
 0x15c   : > { %v548_v33 = vmul.f32 %v1222_v2, %v504_v3  ;;  %v544_v12 = vmul.f32 %v543_v30, %v1401_v19  ;;  %v1134_v30 = vld [vmem:[%s1386_s7 + $0x90] sm:$0xff] }
 0x15e   : > { %v549_v41 = vmul.f32 0.5, %v548_v33  ;;  %v545_v11 = vmul.f32 %v544_v12, %v539_v20  ;;  %v627_v20 = vadd.f32 %v586_v61, %v1454_v56  ;;  %v615_v33 = vadd.f32 %v586_v61, %v1399_v16 }
 0x160   : > { %v550_v38 = vmul.f32 %v1130_v40, %v549_v41  ;;  %v569_v43 = vmul.f32 %v545_v11, %v1438_v48  ;;  %v576_v44 = vmul.f32 %v545_v11, %v1452_v55  ;;  %v553_v51 = vmul.f32 %v545_v11, %v1410_v25 }
 0x162   : > { %v570_v46 = vadd.f32 %v569_v43, %v514_v49  ;;  %v551_v47 = vmul.f32 %v550_v38, %v538_v14  ;;  %v577_v52 = vadd.f32 %v576_v44, %v575_v62 }
 0x164   : > { %v552_v54 = vsub.f32 %v504_v3, %v551_v47  ;;  %v564_v39 = vadd.f32 %v551_v47, %v509_v10  ;;  %v580_v57 = vsub.f32 %v577_v52, %v579_v45  ;;  %v573_v36 = vsub.f32 %v570_v46, %v572_v42 }
 0x166   : > { %v554_v58 = vadd.f32 %v553_v51, %v552_v54  ;;  %v565_v23 = vsub.f32 %v564_v39, %v545_v11  ;;  %v588_v3 = vmax.f32 %v573_v36, 0.01  ;;  %v621_v12 = vmul.f32 %v620_v6, %v573_v36 }
 0x167   : > { %v628_v11 = vmul.f32 %v627_v20, %v580_v57 }
 0x168   : > { %v556_v63 = vadd.f32 %v555_v24, %v554_v58  ;;  %v568_v1 = vsub.f32 %v565_v23, %v567_v53  ;;  %v606_v53 = vmul.f32 %v573_v36, %v1420_v31 }
 0x16a   : > { %v558_v5 = vadd.f32 %v557_v59, %v556_v63  ;;  %v587_v9 = vmax.f32 %v568_v1, 0.01  ;;  %v623_v34 = vmul.f32 %v568_v1, %v1444_v50  ;;  %v604_v44 = vmul.f32 %v568_v1, %v1414_v26 }
 0x16b   : > { %v616_v45 = vmul.f32 %v615_v33, %v568_v1  ;;  %v608_v59 = vmul.f32 %v580_v57, %v1425_v35 }
 0x16c   : > { %v560_v13 = vadd.f32 %v559_v0, %v558_v5  ;;  %v589_v10 = vmul.f32 %v587_v9, %v1365_v7  ;;  %v624_v14 = vadd.f32 %v623_v34, %v580_v57  ;;  %v1148_v57 = vld [vmem:[%s1376_s26 + $0xa0] sm:$0xff] }
 0x16e   : > { %v563_v15 = vadd.f32 %v562_v8, %v560_v13  ;;  %v590_v17 = vmul.f32 1.442695, %v589_v10 }
 0x170   : > { %v595_v49 = vadd.f32 %v563_v15, %v1355_v4  ;;  %1223 = vpow2.f32 %v590_v17  ;;  %v610_v54 = vsub.f32 8.0, %v563_v15 }
 0x172   : > { %1225 = vrcp.f32 %v595_v49  ;;  %v611_v63 = vmul.f32 %v610_v54, %v586_v61 }
 0x17d   : > { %v1224_v62 = vpop.eup %1223 }
 0x17e   : > { %v592_v22 = vsub.f32 1.0, %v1224_v62 }
 0x17f   : > { %v1226_v28 = vpop.eup %1225 }
 0x180   : > { %v597_v21 = vmul.f32 %v1226_v28, %v563_v15  ;;  %v593_v29 = vmul.f32 %v592_v22, %v1401_v19  ;;  %v1146_v22 = vld [vmem:[%s1386_s7 + $0xa0] sm:$0xff] }
 0x182   : > { %v594_v2 = vmul.f32 %v593_v29, %v588_v3  ;;  %v598_v32 = vmul.f32 0.5, %v597_v21 }
 0x184   : > { %v599_v37 = vmul.f32 %v1134_v30, %v598_v32  ;;  %v618_v40 = vmul.f32 %v594_v2, %v1438_v48  ;;  %v625_v41 = vmul.f32 %v594_v2, %v1452_v55  ;;  %v602_v27 = vmul.f32 %v594_v2, %v1410_v25 }
 0x186   : > { %v600_v42 = vmul.f32 %v599_v37, %v587_v9  ;;  %v619_v38 = vadd.f32 %v618_v40, %v573_v36  ;;  %v626_v43 = vadd.f32 %v625_v41, %v624_v14  ;;  %v646_v14 = vmul.f32 0.5, %v1148_v57 }
 0x188   : > { %v601_v46 = vsub.f32 %v563_v15, %v600_v42  ;;  %v613_v47 = vadd.f32 %v600_v42, %v568_v1  ;;  %v622_v51 = vsub.f32 %v619_v38, %v621_v12  ;;  %v629_v52 = vsub.f32 %v626_v43, %v628_v11 }
 0x189   : > { %v680_v18 = vadd.f32 %v646_v14, %v1420_v31  ;;  %v687_v3 = vadd.f32 %v646_v14, %v1454_v56  ;;  %v675_v29 = vadd.f32 %v646_v14, %v1399_v16 }
 0x18a   : > { %v603_v24 = vadd.f32 %v602_v27, %v601_v46  ;;  %v614_v39 = vsub.f32 %v613_v47, %v594_v2  ;;  %1142 = vst [vmem:[%s1332_s9 + $0x150] sm:$0xff] %v622_v51  ;;  %1144 = vst [vmem:[%s1332_s9 + $0x1d0] sm:$0xff] %v629_v52  ;;  %v648_v15 = vmax.f32 %v622_v51, 0.01 }
 0x18b   : > { %v681_v21 = vmul.f32 %v680_v18, %v622_v51  ;;  %v688_v32 = vmul.f32 %v687_v3, %v629_v52 }
 0x18c   : > { %v605_v58 = vadd.f32 %v604_v44, %v603_v24  ;;  %v617_v60 = vsub.f32 %v614_v39, %v616_v45  ;;  %v666_v45 = vmul.f32 %v622_v51, %v1420_v31 }
 0x18e   : > { %v607_v23 = vadd.f32 %v606_v53, %v605_v58  ;;  %1140 = vst [vmem:[%s1332_s9 + $0xd0] sm:$0xff] %v617_v60  ;;  %v647_v0 = vmax.f32 %v617_v60, 0.01  ;;  %v683_v1 = vmul.f32 %v617_v60, %v1444_v50  ;;  %v664_v41 = vmul.f32 %v617_v60, %v1414_v26 }
 0x18f   : > { %v676_v11 = vmul.f32 %v675_v29, %v617_v60  ;;  %v668_v53 = vmul.f32 %v629_v52, %v1425_v35 }
 0x190   : > { %v609_v5 = vadd.f32 %v608_v59, %v607_v23  ;;  %v649_v8 = vmul.f32 %v647_v0, %v1365_v7  ;;  %v684_v36 = vadd.f32 %v683_v1, %v629_v52 }
 0x192   : > { %v612_v9 = vadd.f32 %v611_v63, %v609_v5  ;;  %v650_v34 = vmul.f32 1.442695, %v649_v8  ;;  %v1152_v8 = vld [vmem:[%s1376_s26 + $0xb0] sm:$0xff] }
 0x193   : > { %v695_v52 = vmul.f32 0.5, %v1152_v8 }
 0x194   : > { %1138 = vst [vmem:[%s1332_s9 + $0x50] sm:$0xff] %v612_v9  ;;  %v655_v13 = vadd.f32 %v612_v9, %v1355_v4  ;;  %1227 = vpow2.f32 %v650_v34  ;;  %v670_v46 = vsub.f32 8.0, %v612_v9 }
 0x195   : > { %v729_v57 = vadd.f32 %v695_v52, %v1420_v31 }
 0x196   : > { %1229 = vrcp.f32 %v655_v13  ;;  %v671_v58 = vmul.f32 %v670_v46, %v646_v14 }
 0x1a1   : > { %v1228_v10 = vpop.eup %1227 }
 0x1a2   : > { %v652_v17 = vsub.f32 1.0, %v1228_v10 }
 0x1a3   : > { %v1230_v49 = vpop.eup %1229 }
 0x1a4   : > { %v657_v62 = vmul.f32 %v1230_v49, %v612_v9  ;;  %v653_v61 = vmul.f32 %v652_v17, %v1401_v19  ;;  %v1150_v17 = vld [vmem:[%s1386_s7 + $0xb0] sm:$0xff] }
 0x1a6   : > { %v658_v28 = vmul.f32 0.5, %v657_v62  ;;  %v654_v6 = vmul.f32 %v653_v61, %v648_v15  ;;  %v736_v15 = vadd.f32 %v695_v52, %v1454_v56  ;;  %v724_v62 = vadd.f32 %v695_v52, %v1399_v16 }
 0x1a8   : > { %v659_v20 = vmul.f32 %v1146_v22, %v658_v28  ;;  %v678_v30 = vmul.f32 %v654_v6, %v1438_v48  ;;  %v685_v2 = vmul.f32 %v654_v6, %v1452_v55  ;;  %v662_v37 = vmul.f32 %v654_v6, %v1410_v25 }
 0x1aa   : > { %v679_v33 = vadd.f32 %v678_v30, %v622_v51  ;;  %v660_v12 = vmul.f32 %v659_v20, %v647_v0  ;;  %v686_v40 = vadd.f32 %v685_v2, %v684_v36 }
 0x1ac   : > { %v661_v42 = vsub.f32 %v612_v9, %v660_v12  ;;  %v673_v27 = vadd.f32 %v660_v12, %v617_v60  ;;  %v689_v38 = vsub.f32 %v686_v40, %v688_v32  ;;  %v682_v43 = vsub.f32 %v679_v33, %v681_v21 }
 0x1ae   : > { %v663_v44 = vadd.f32 %v662_v37, %v661_v42  ;;  %v674_v47 = vsub.f32 %v673_v27, %v654_v6  ;;  %v697_v9 = vmax.f32 %v682_v43, 0.01  ;;  %v730_v61 = vmul.f32 %v729_v57, %v682_v43 }
 0x1af   : > { %v737_v6 = vmul.f32 %v736_v15, %v689_v38 }
 0x1b0   : > { %v665_v24 = vadd.f32 %v664_v41, %v663_v44  ;;  %v677_v54 = vsub.f32 %v674_v47, %v676_v11  ;;  %v715_v11 = vmul.f32 %v682_v43, %v1420_v31 }
 0x1b2   : > { %v667_v39 = vadd.f32 %v666_v45, %v665_v24  ;;  %v696_v59 = vmax.f32 %v677_v54, 0.01  ;;  %v732_v23 = vmul.f32 %v677_v54, %v1444_v50  ;;  %v713_v2 = vmul.f32 %v677_v54, %v1414_v26 }
 0x1b3   : > { %v725_v32 = vmul.f32 %v724_v62, %v677_v54  ;;  %v717_v45 = vmul.f32 %v689_v38, %v1425_v35 }
 0x1b4   : > { %v669_v63 = vadd.f32 %v668_v53, %v667_v39  ;;  %v698_v60 = vmul.f32 %v696_v59, %v1365_v7  ;;  %v733_v0 = vadd.f32 %v732_v23, %v689_v38  ;;  %v1164_v38 = vld [vmem:[%s1376_s26 + $0xc0] sm:$0xff] }
 0x1b6   : > { %v672_v1 = vadd.f32 %v671_v58, %v669_v63  ;;  %v699_v5 = vmul.f32 1.442695, %v698_v60 }
 0x1b8   : > { %v704_v51 = vadd.f32 %v672_v1, %v1355_v4  ;;  %1231 = vpow2.f32 %v699_v5  ;;  %v719_v42 = vsub.f32 8.0, %v672_v1 }
 0x1ba   : > { %1233 = vrcp.f32 %v704_v51  ;;  %v720_v24 = vmul.f32 %v719_v42, %v695_v52 }
 0x1c5   : > { %v1232_v36 = vpop.eup %1231 }
 0x1c6   : > { %v701_v34 = vsub.f32 1.0, %v1232_v36 }
 0x1c7   : > { %v1234_v13 = vpop.eup %1233 }
 0x1c8   : > { %v706_v10 = vmul.f32 %v1234_v13, %v672_v1  ;;  %v702_v14 = vmul.f32 %v701_v34, %v1401_v19  ;;  %v1162_v34 = vld [vmem:[%s1386_s7 + $0xc0] sm:$0xff] }
 0x1ca   : > { %v703_v49 = vmul.f32 %v702_v14, %v697_v9  ;;  %v707_v18 = vmul.f32 0.5, %v706_v10 }
 0x1cc   : > { %v708_v3 = vmul.f32 %v1150_v17, %v707_v18  ;;  %v727_v22 = vmul.f32 %v703_v49, %v1438_v48  ;;  %v734_v28 = vmul.f32 %v703_v49, %v1452_v55  ;;  %v711_v29 = vmul.f32 %v703_v49, %v1410_v25 }
 0x1ce   : > { %v709_v21 = vmul.f32 %v708_v3, %v696_v59  ;;  %v728_v20 = vadd.f32 %v727_v22, %v682_v43  ;;  %v735_v30 = vadd.f32 %v734_v28, %v733_v0  ;;  %v755_v0 = vmul.f32 0.5, %v1164_v38 }
 0x1d0   : > { %v710_v33 = vsub.f32 %v672_v1, %v709_v21  ;;  %v722_v12 = vadd.f32 %v709_v21, %v677_v54  ;;  %v731_v37 = vsub.f32 %v728_v20, %v730_v61  ;;  %v738_v40 = vsub.f32 %v735_v30, %v737_v6 }
 0x1d1   : > { %v789_v8 = vadd.f32 %v755_v0, %v1420_v31  ;;  %v796_v9 = vadd.f32 %v755_v0, %v1454_v56  ;;  %v784_v10 = vadd.f32 %v755_v0, %v1399_v16 }
 0x1d2   : > { %v712_v41 = vadd.f32 %v711_v29, %v710_v33  ;;  %v723_v27 = vsub.f32 %v722_v12, %v703_v49  ;;  %1158 = vst [vmem:[%s1332_s9 + $0x160] sm:$0xff] %v731_v37  ;;  %1160 = vst [vmem:[%s1332_s9 + $0x1e0] sm:$0xff] %v738_v40  ;;  %v757_v1 = vmax.f32 %v731_v37, 0.01 }
 0x1d3   : > { %v790_v14 = vmul.f32 %v789_v8, %v731_v37  ;;  %v797_v18 = vmul.f32 %v796_v9, %v738_v40 }
 0x1d4   : > { %v714_v44 = vadd.f32 %v713_v2, %v712_v41  ;;  %v726_v46 = vsub.f32 %v723_v27, %v725_v32  ;;  %v775_v32 = vmul.f32 %v731_v37, %v1420_v31  ;;  %v777_v41 = vmul.f32 %v738_v40, %v1425_v35 }
 0x1d6   : > { %v716_v47 = vadd.f32 %v715_v11, %v714_v44  ;;  %1156 = vst [vmem:[%s1332_s9 + $0xe0] sm:$0xff] %v726_v46  ;;  %v756_v53 = vmax.f32 %v726_v46, 0.01  ;;  %v792_v54 = vmul.f32 %v726_v46, %v1444_v50  ;;  %v773_v28 = vmul.f32 %v726_v46, %v1414_v26 }
 0x1d7   : > { %v785_v6 = vmul.f32 %v784_v10, %v726_v46 }
 0x1d8   : > { %v718_v39 = vadd.f32 %v717_v45, %v716_v47  ;;  %v758_v58 = vmul.f32 %v756_v53, %v1365_v7  ;;  %v793_v43 = vadd.f32 %v792_v54, %v738_v40 }
 0x1da   : > { %v721_v59 = vadd.f32 %v720_v24, %v718_v39  ;;  %v759_v23 = vmul.f32 1.442695, %v758_v58  ;;  %v1168_v58 = vld [vmem:[%s1376_s26 + $0xd0] sm:$0xff] }
 0x1db   : > { %v804_v40 = vmul.f32 0.5, %v1168_v58 }
 0x1dc   : > { %1154 = vst [vmem:[%s1332_s9 + $0x60] sm:$0xff] %v721_v59  ;;  %v764_v63 = vadd.f32 %v721_v59, %v1355_v4  ;;  %1235 = vpow2.f32 %v759_v23  ;;  %v779_v33 = vsub.f32 8.0, %v721_v59 }
 0x1dd   : > { %v838_v38 = vadd.f32 %v804_v40, %v1420_v31 }
 0x1de   : > { %1237 = vrcp.f32 %v764_v63  ;;  %v780_v44 = vmul.f32 %v779_v33, %v755_v0  ;;  %v1166_v0 = vld [vmem:[%s1386_s7 + $0xd0] sm:$0xff] }
 0x1e9   : > { %v1236_v60 = vpop.eup %1235 }
 0x1ea   : > { %v761_v5 = vsub.f32 1.0, %v1236_v60 }
 0x1eb   : > { %v1238_v51 = vpop.eup %1237 }
 0x1ec   : > { %v766_v36 = vmul.f32 %v1238_v51, %v721_v59  ;;  %v762_v52 = vmul.f32 %v761_v5, %v1401_v19  ;;  %v833_v51 = vadd.f32 %v804_v40, %v1399_v16 }
 0x1ee   : > { %v767_v13 = vmul.f32 0.5, %v766_v36  ;;  %v763_v57 = vmul.f32 %v762_v52, %v757_v1 }
 0x1f0   : > { %v768_v15 = vmul.f32 %v1162_v34, %v767_v13  ;;  %v787_v17 = vmul.f32 %v763_v57, %v1438_v48  ;;  %v794_v49 = vmul.f32 %v763_v57, %v1452_v55  ;;  %v771_v61 = vmul.f32 %v763_v57, %v1410_v25 }
 0x1f2   : > { %v769_v62 = vmul.f32 %v768_v15, %v756_v53  ;;  %v788_v3 = vadd.f32 %v787_v17, %v731_v37  ;;  %v795_v22 = vadd.f32 %v794_v49, %v793_v43 }
 0x1f4   : > { %v770_v21 = vsub.f32 %v721_v59, %v769_v62  ;;  %v782_v29 = vadd.f32 %v769_v62, %v726_v46  ;;  %v791_v20 = vsub.f32 %v788_v3, %v790_v14  ;;  %v798_v30 = vsub.f32 %v795_v22, %v797_v18 }
 0x1f6   : > { %v772_v2 = vadd.f32 %v771_v61, %v770_v21  ;;  %v783_v12 = vsub.f32 %v782_v29, %v763_v57  ;;  %v806_v59 = vmax.f32 %v791_v20, 0.01 }
 0x1f8   : > { %v774_v11 = vadd.f32 %v773_v28, %v772_v2  ;;  %v786_v42 = vsub.f32 %v783_v12, %v785_v6 }
 0x1fa   : > { %v776_v27 = vadd.f32 %v775_v32, %v774_v11  ;;  %v805_v45 = vmax.f32 %v786_v42, 0.01  ;;  %v841_v47 = vmul.f32 %v786_v42, %v1444_v50  ;;  %v834_v10 = vmul.f32 %v833_v51, %v786_v42 }
 0x1fc   : > { %v778_v24 = vadd.f32 %v777_v41, %v776_v27  ;;  %v807_v46 = vmul.f32 %v805_v45, %v1365_v7  ;;  %v842_v53 = vadd.f32 %v841_v47, %v798_v30  ;;  %v845_v7 = vadd.f32 %v804_v40, %v1454_v56 }
 0x1fd   : > { %v822_v56 = vmul.f32 %v786_v42, %v1414_v26 }
 0x1fe   : > { %v781_v54 = vadd.f32 %v780_v44, %v778_v24  ;;  %v808_v39 = vmul.f32 1.442695, %v807_v46  ;;  %v846_v9 = vmul.f32 %v845_v7, %v798_v30 }
 0x200   : > { %1239 = vpow2.f32 %v808_v39  ;;  %v813_v37 = vadd.f32 %v781_v54, %v1355_v4  ;;  %v839_v4 = vmul.f32 %v838_v38, %v791_v20  ;;  %v828_v49 = vsub.f32 8.0, %v781_v54 }
 0x202   : > { %1241 = vrcp.f32 %v813_v37  ;;  %v829_v26 = vmul.f32 %v828_v49, %v804_v40 }
 0x20d   : > { %v1240_v43 = vpop.eup %1239 }
 0x20e   : > { %v810_v23 = vsub.f32 1.0, %v1240_v43 }
 0x20f   : > { %v1242_v63 = vpop.eup %1241 }
 0x210   : > { %v811_v50 = vmul.f32 %v810_v23, %v1401_v19  ;;  %v815_v60 = vmul.f32 %v1242_v63, %v781_v54 }
 0x212   : > { %v812_v1 = vmul.f32 %v811_v50, %v806_v59  ;;  %v816_v5 = vmul.f32 0.5, %v815_v60 }
 0x214   : > { %v817_v8 = vmul.f32 %v1166_v0, %v816_v5  ;;  %v836_v36 = vmul.f32 %v812_v1, %v1438_v48  ;;  %v843_v52 = vmul.f32 %v812_v1, %v1452_v55  ;;  %v820_v19 = vmul.f32 %v812_v1, %v1410_v25 }
 0x215   : > { %v824_v55 = vmul.f32 %v791_v20, %v1420_v31  ;;  %v826_v25 = vmul.f32 %v798_v30, %v1425_v35 }
 0x216   : > { %v818_v34 = vmul.f32 %v817_v8, %v805_v45  ;;  %v837_v13 = vadd.f32 %v836_v36, %v791_v20  ;;  %v844_v57 = vadd.f32 %v843_v52, %v842_v53 }
 0x218   : > { %v819_v14 = vsub.f32 %v781_v54, %v818_v34  ;;  %v831_v16 = vadd.f32 %v818_v34, %v786_v42  ;;  %v840_v15 = vsub.f32 %v837_v13, %v839_v4  ;;  %v847_v17 = vsub.f32 %v844_v57, %v846_v9 }
 0x21a   : > { %v821_v48 = vadd.f32 %v820_v19, %v819_v14  ;;  %v832_v18 = vsub.f32 %v831_v16, %v812_v1  ;;  %1174 = vst [vmem:[%s1332_s9 + $0x170] sm:$0xff] %v840_v15  ;;  %1176 = vst [vmem:[%s1332_s9 + $0x1f0] sm:$0xff] %v847_v17 }
 0x21c   : > { %v823_v62 = vadd.f32 %v822_v56, %v821_v48  ;;  %v835_v61 = vsub.f32 %v832_v18, %v834_v10 }
 0x21e   : > { %v825_v3 = vadd.f32 %v824_v55, %v823_v62  ;;  %1172 = vst [vmem:[%s1332_s9 + $0xf0] sm:$0xff] %v835_v61 }
 0x220   : > { %v827_v22 = vadd.f32 %v826_v25, %v825_v3  ;;  %30 = sbr.rel (!%p28_p10) target bundleno = 26 (0x1a), region = 103 }
 0x222   : > { %v830_v28 = vadd.f32 %v829_v26, %v827_v22 }
 0x224   : > { %1170 = vst [vmem:[%s1332_s9 + $0x70] sm:$0xff] %v830_v28 }

</bundles_post_ra>
